<compile_context>
chip_gen: v7x
topology: tpu7x:2x2x1
jax: 0.10.0
libtpu: 0.0.40
codegen_flags: <defaults>
</compile_context>

<pallas_src>
import functools

import jax
import jax.numpy as jnp
from jax import lax
from jax.experimental import pallas as pl
from jax.experimental.pallas import tpu as pltpu

EPS = 1e-5
# MXU operand dtype.  bf16 operands + f32 accumulation is the fast MXU path;
# set to jnp.float32 to recover ~1e-6 agreement with the f32 reference.
MXU_DTYPE = jnp.bfloat16

# conv1 geometry (fixed by the M3 architecture).
K1, S1, PAD1 = 80, 4, 42
N_PHASE = 4   # = conv1 stride = pool1 kernel
N_AGRP = 6    # ceil((K1 + (N_PHASE-1)*S1) / 16): 16-sample input groups/phase


# ---------------------------------------------------------------------------
# Fused Pallas kernel: one grid step == one batch element, all in VMEM.
# ---------------------------------------------------------------------------
def m3_kernel(xg_ref, w1g_ref, s1_ref, t1_ref, w2s_ref, s2_ref, t2_ref,
              wfc_ref, bfc_ref, o_ref, p1s_ref, y2s_ref, *, P1, P2):
    f32 = jnp.float32
    s1, t1 = s1_ref[...], t1_ref[...]              # (1, C) f32

    # ---- conv1 + bn1 + MaxPool(4) + ReLU  (phase-decomposed, im2col-free) --
    pooled1 = None
    for r in range(N_PHASE):
        acc = None
        for a in range(N_AGRP):
            xa = xg_ref[0, a:a + P1, :].astype(MXU_DTYPE)      # (P1, 16)
            d = jnp.dot(xa, w1g_ref[r, a], preferred_element_type=f32)
            acc = d if acc is None else acc + d
        y = acc * s1 + t1                    # BN affine BEFORE max (scale<0 ok)
        pooled1 = y if pooled1 is None else jnp.maximum(pooled1, y)
    pooled1 = jnp.maximum(pooled1, 0.0)      # ReLU commutes with max  (P1, C)

    # ---- conv2 (k=3, pad=1) + bn2 + ReLU, pooled1 stays in VMEM ------------
    OFF = 8                                   # aligned bulk-store offset
    p1s_ref[...] = jnp.zeros_like(p1s_ref)    # zero padding rows
    p1s_ref[OFF:OFF + P1, :] = pooled1
    y2 = None
    for d in range(3):
        lhs = p1s_ref[OFF - 1 + d:OFF - 1 + d + P1, :].astype(MXU_DTYPE)
        t = jnp.dot(lhs, w2s_ref[d], preferred_element_type=f32)
        y2 = t if y2 is None else y2 + t
    y2 = jnp.maximum(y2 * s2_ref[...] + t2_ref[...], 0.0)       # (P1, C) f32

    # ---- MaxPool(4) + global average pool (fused) --------------------------
    # m[i] = max(y2[i:i+4]) via unit-stride shifted slices of a zero-padded
    # scratch; a masked row-sum then picks the head row of each complete group.
    y2s_ref[...] = jnp.zeros_like(y2s_ref)
    y2s_ref[0:P1, :] = y2
    m = y2
    for d in range(1, 4):
        m = jnp.maximum(m, y2s_ref[d:d + P1, :])
    row = lax.broadcasted_iota(jnp.int32, (P1, 1), 0)
    head = ((row % 4) == 0) & (row < 4 * P2)
    feat = jnp.sum(jnp.where(head, m, 0.0), axis=0, keepdims=True) * (1.0 / P2)

    # ---- fc1 ----------------------------------------------------------------
    out = jnp.dot(feat, wfc_ref[...], preferred_element_type=f32) + bfc_ref[...]
    o_ref[0] = out.astype(o_ref.dtype)


# ---------------------------------------------------------------------------
# Parameters (PyTorch-style shapes) and folding into kernel form
# ---------------------------------------------------------------------------
def init_params(key, n_input, n_output, n_channel):
    ks = jax.random.split(key, 16)
    p = {}
    p["conv1_w"] = 0.05 * jax.random.normal(ks[0], (n_channel, n_input, K1), jnp.float32)
    p["conv1_b"] = 0.05 * jax.random.normal(ks[1], (n_channel,), jnp.float32)
    p["bn1_g"] = 1.0 + 0.1 * jax.random.normal(ks[2], (n_channel,), jnp.float32)
    p["bn1_b"] = 0.1 * jax.random.normal(ks[3], (n_channel,), jnp.float32)
    p["bn1_rm"] = 0.1 * jax.random.normal(ks[4], (n_channel,), jnp.float32)
    p["bn1_rv"] = 1.0 + 0.1 * jnp.abs(jax.random.normal(ks[5], (n_channel,), jnp.float32))
    p["conv2_w"] = 0.05 * jax.random.normal(ks[6], (n_channel, n_channel, 3), jnp.float32)
    p["conv2_b"] = 0.05 * jax.random.normal(ks[7], (n_channel,), jnp.float32)
    p["bn2_g"] = 1.0 + 0.1 * jax.random.normal(ks[8], (n_channel,), jnp.float32)
    p["bn2_b"] = 0.1 * jax.random.normal(ks[9], (n_channel,), jnp.float32)
    p["bn2_rm"] = 0.1 * jax.random.normal(ks[10], (n_channel,), jnp.float32)
    p["bn2_rv"] = 1.0 + 0.1 * jnp.abs(jax.random.normal(ks[11], (n_channel,), jnp.float32))
    p["fc_w"] = 0.05 * jax.random.normal(ks[12], (n_output, n_channel), jnp.float32)
    p["fc_b"] = 0.05 * jax.random.normal(ks[13], (n_output,), jnp.float32)
    return p


def fold_params(p):
    """Fold conv bias + BatchNorm (eval) into per-channel scale/bias and
    rearrange weights into the phase/group-decomposed matmul form."""
    C = p["conv1_w"].shape[0]
    f = {}
    # conv1: w1g[r, a, t, c] = W1[c, 16*a + t - 4*r]  (0 outside [0, K1)).
    w1 = p["conv1_w"][:, 0, :].T                                  # (K1, C)
    rr = jnp.arange(N_PHASE)[:, None, None]
    aa = jnp.arange(N_AGRP)[None, :, None]
    tt = jnp.arange(16)[None, None, :]
    k = 16 * aa + tt - S1 * rr                                    # (4, 6, 16)
    valid = (k >= 0) & (k < K1)
    w1g = jnp.where(valid[..., None], w1[jnp.clip(k, 0, K1 - 1)], 0.0)
    f["w1g"] = w1g.astype(MXU_DTYPE)                              # (4, 6, 16, C)
    s1 = p["bn1_g"] / jnp.sqrt(p["bn1_rv"] + EPS)
    f["s1"] = s1.reshape(1, C)
    f["t1"] = ((p["conv1_b"] - p["bn1_rm"]) * s1 + p["bn1_b"]).reshape(1, C)
    # conv2: w2s[d] = W2[:, :, d].T  -> (3, C_in, C_out)
    f["w2s"] = jnp.transpose(p["conv2_w"], (2, 1, 0)).astype(MXU_DTYPE)
    s2 = p["bn2_g"] / jnp.sqrt(p["bn2_rv"] + EPS)
    f["s2"] = s2.reshape(1, C)
    f["t2"] = ((p["conv2_b"] - p["bn2_rm"]) * s2 + p["bn2_b"]).reshape(1, C)
    # fc1
    f["wfc"] = p["fc_w"].T                                        # (C, n_out) f32
    f["bfc"] = p["fc_b"].reshape(1, -1)
    return f


# ---------------------------------------------------------------------------
# M3 forward (single pallas_call)
# ---------------------------------------------------------------------------
def m3_forward(x, fp):
    """x: (B, n_input, L) — PyTorch NCL layout, n_input must be 1."""
    B, Cin, L = x.shape
    assert Cin == 1, "M3 Pallas kernel is specialised to n_input == 1"
    L1 = (L + 2 * PAD1 - K1) // S1 + 1
    P1 = L1 // 4                       # length after pool1
    P2 = P1 // 4                       # length after pool2
    assert P1 >= 1 and P2 >= 1, "input too short for M3"
    C = fp["s1"].shape[-1]
    n_out = fp["bfc"].shape[-1]

    # Only JAX-side prep: conv zero-padding + view as 16-sample rows.
    R = P1 + N_AGRP - 1
    total = 16 * R
    xg = jnp.pad(x[:, 0, :], ((0, 0), (PAD1, total - L - PAD1)))
    xg = xg.reshape(B, R, 16)

    out = pl.pallas_call(
        functools.partial(m3_kernel, P1=P1, P2=P2),
        out_shape=jax.ShapeDtypeStruct((B, 1, n_out), jnp.float32),
        grid=(B,),
        in_specs=[
            pl.BlockSpec((1, R, 16), lambda b: (b, 0, 0)),
            pl.BlockSpec((N_PHASE, N_AGRP, 16, C), lambda b: (0, 0, 0, 0)),
            pl.BlockSpec((1, C), lambda b: (0, 0)),
            pl.BlockSpec((1, C), lambda b: (0, 0)),
            pl.BlockSpec((3, C, C), lambda b: (0, 0, 0)),
            pl.BlockSpec((1, C), lambda b: (0, 0)),
            pl.BlockSpec((1, C), lambda b: (0, 0)),
            pl.BlockSpec((C, n_out), lambda b: (0, 0)),
            pl.BlockSpec((1, n_out), lambda b: (0, 0)),
        ],
        out_specs=pl.BlockSpec((1, 1, n_out), lambda b: (b, 0, 0)),
        scratch_shapes=[
            pltpu.VMEM((P1 + 16, C), jnp.float32),   # zero-padded pooled1
            pltpu.VMEM((P1 + 8, C), jnp.float32),    # zero-padded relu(conv2)
        ],
        compiler_params=pltpu.CompilerParams(
            dimension_semantics=("parallel",)),
    )(xg, fp["w1g"], fp["s1"], fp["t1"], fp["w2s"], fp["s2"], fp["t2"],
      fp["wfc"], fp["bfc"])
    return out[:, 0, :]


# ---------------------------------------------------------------------------
# Pure-JAX reference (lax.conv, f32) for validation
# ---------------------------------------------------------------------------
def m3_reference(x, p):
    dn = ("NCH", "OIH", "NCH")

    def conv_bn_relu(z, w, b, g, be, rm, rv, stride, pad):
        z = lax.conv_general_dilated(z, w, (stride,), [(pad, pad)],
                                     dimension_numbers=dn)
        z = z + b[None, :, None]
        z = (z - rm[None, :, None]) / jnp.sqrt(rv[None, :, None] + EPS)
        z = z * g[None, :, None] + be[None, :, None]
        return jnp.maximum(z, 0.0)

    def maxpool4(z):
        B, C, L = z.shape
        P = L // 4
        return z[:, :, :P * 4].reshape(B, C, P, 4).max(axis=-1)

    z = conv_bn_relu(x, p["conv1_w"], p["conv1_b"], p["bn1_g"], p["bn1_b"],
                     p["bn1_rm"], p["bn1_rv"], S1, PAD1)
    z = maxpool4(z)
    z = conv_bn_relu(z, p["conv2_w"], p["conv2_b"], p["bn2_g"], p["bn2_b"],
                     p["bn2_rm"], p["bn2_rv"], 1, 1)
    z = maxpool4(z)
    z = jnp.mean(z, axis=-1)                     # global avg pool + squeeze
    return z @ p["fc_w"].T + p["fc_b"]


# ---------------------------------------------------------------------------
if __name__ == "__main__":
    key = jax.random.PRNGKey(0)
    k_param, k_x = jax.random.split(key)

    B, n_input, n_channel, n_output = 2, 1, 32, 10
    L = 504  # conv1 -> 128, pool1 -> 32, conv2 -> 32, pool2 -> 8

    params = init_params(k_param, n_input, n_output, n_channel)
    folded = fold_params(params)
    x = jax.random.normal(k_x, (B, n_input, L), jnp.float32)

    out = jax.block_until_ready(m3_forward(x, folded))
    ref = m3_reference(x, params)

    assert out.shape == (B, n_output), out.shape
    # bf16 MXU operands (f32 accumulation/epilogue) -> relaxed tolerance.
    tol = 1e-4 if MXU_DTYPE == jnp.float32 else 1e-2
    err = jnp.max(jnp.abs(out - ref))
    assert jnp.allclose(out, ref, rtol=tol, atol=tol), f"max abs err {err}"

    print("KERNEL_OK")
</pallas_src>

<mosaic_0001>
module attributes {stable_mosaic.version = 11 : i64} {
  func.func @m3_kernel(%arg0: i32, %arg1: memref<1x37x16xf32, #tpu.memory_space<vmem>>, %arg2: memref<4x6x16x32xbf16, #tpu.memory_space<vmem>>, %arg3: memref<1x32xf32, #tpu.memory_space<vmem>>, %arg4: memref<1x32xf32, #tpu.memory_space<vmem>>, %arg5: memref<3x32x32xbf16, #tpu.memory_space<vmem>>, %arg6: memref<1x32xf32, #tpu.memory_space<vmem>>, %arg7: memref<1x32xf32, #tpu.memory_space<vmem>>, %arg8: memref<32x10xf32, #tpu.memory_space<vmem>>, %arg9: memref<1x10xf32, #tpu.memory_space<vmem>>, %arg10: memref<1x1x10xf32, #tpu.memory_space<vmem>>, %arg11: memref<48x32xf32, #tpu.memory_space<vmem>>, %arg12: memref<40x32xf32, #tpu.memory_space<vmem>>) attributes {dimension_semantics = [#tpu.dimension_semantics<parallel>], iteration_bounds = array<i64: 2>, scalar_prefetch = 0 : i64, scratch_operands = 2 : i64, tpu.core_type = #tpu.core_type<tc>, window_params = [{transform_indices = @transform_0, window_bounds = array<i64: 1, 37, 16>}, {pipeline_mode = #tpu.pipeline_mode<synchronous>, transform_indices = @transform_1, window_bounds = array<i64: 4, 6, 16, 32>}, {pipeline_mode = #tpu.pipeline_mode<synchronous>, transform_indices = @transform_2, window_bounds = array<i64: 1, 32>}, {pipeline_mode = #tpu.pipeline_mode<synchronous>, transform_indices = @transform_3, window_bounds = array<i64: 1, 32>}, {pipeline_mode = #tpu.pipeline_mode<synchronous>, transform_indices = @transform_4, window_bounds = array<i64: 3, 32, 32>}, {pipeline_mode = #tpu.pipeline_mode<synchronous>, transform_indices = @transform_5, window_bounds = array<i64: 1, 32>}, {pipeline_mode = #tpu.pipeline_mode<synchronous>, transform_indices = @transform_6, window_bounds = array<i64: 1, 32>}, {pipeline_mode = #tpu.pipeline_mode<synchronous>, transform_indices = @transform_7, window_bounds = array<i64: 32, 10>}, {pipeline_mode = #tpu.pipeline_mode<synchronous>, transform_indices = @transform_8, window_bounds = array<i64: 1, 10>}, {transform_indices = @transform_9, window_bounds = array<i64: 1, 1, 10>}]} {
    %c0 = arith.constant 0 : index
    %c0_0 = arith.constant 0 : index
    %0 = vector.load %arg3[%c0, %c0_0] : memref<1x32xf32, #tpu.memory_space<vmem>>, vector<1x32xf32>
    %c0_1 = arith.constant 0 : index
    %c0_2 = arith.constant 0 : index
    %1 = vector.load %arg4[%c0_1, %c0_2] : memref<1x32xf32, #tpu.memory_space<vmem>>, vector<1x32xf32>
    %c0_3 = arith.constant 0 : index
    %c0_4 = arith.constant 0 : index
    %c0_5 = arith.constant 0 : index
    %2 = vector.load %arg1[%c0_3, %c0_4, %c0_5] : memref<1x37x16xf32, #tpu.memory_space<vmem>>, vector<1x32x16xf32>
    %3 = vector.shape_cast %2 : vector<1x32x16xf32> to vector<32x16xf32>
    %4 = arith.truncf %3 : vector<32x16xf32> to vector<32x16xbf16>
    %c0_6 = arith.constant 0 : index
    %c0_7 = arith.constant 0 : index
    %c0_8 = arith.constant 0 : index
    %c0_9 = arith.constant 0 : index
    %5 = vector.load %arg2[%c0_6, %c0_7, %c0_8, %c0_9] : memref<4x6x16x32xbf16, #tpu.memory_space<vmem>>, vector<1x1x16x32xbf16>
    %6 = vector.shape_cast %5 : vector<1x1x16x32xbf16> to vector<16x32xbf16>
    %cst = arith.constant dense<0.000000e+00> : vector<32x32xf32>
    %7 = tpu.matmul %4, %6, %cst {dimension_numbers = #tpu.dot_dimension_numbers<[1], [0], [0], [1], [0, 0, 1, 1], [], []>} : vector<32x16xbf16>, vector<16x32xbf16>, vector<32x32xf32> -> vector<32x32xf32>
    %c0_10 = arith.constant 0 : index
    %c1 = arith.constant 1 : index
    %c0_11 = arith.constant 0 : index
    %8 = vector.load %arg1[%c0_10, %c1, %c0_11] : memref<1x37x16xf32, #tpu.memory_space<vmem>>, vector<1x32x16xf32>
    %9 = vector.shape_cast %8 : vector<1x32x16xf32> to vector<32x16xf32>
    %10 = arith.truncf %9 : vector<32x16xf32> to vector<32x16xbf16>
    %c0_12 = arith.constant 0 : index
    %c1_13 = arith.constant 1 : index
    %c0_14 = arith.constant 0 : index
    %c0_15 = arith.constant 0 : index
    %11 = vector.load %arg2[%c0_12, %c1_13, %c0_14, %c0_15] : memref<4x6x16x32xbf16, #tpu.memory_space<vmem>>, vector<1x1x16x32xbf16>
    %12 = vector.shape_cast %11 : vector<1x1x16x32xbf16> to vector<16x32xbf16>
    %cst_16 = arith.constant dense<0.000000e+00> : vector<32x32xf32>
    %13 = tpu.matmul %10, %12, %cst_16 {dimension_numbers = #tpu.dot_dimension_numbers<[1], [0], [0], [1], [0, 0, 1, 1], [], []>} : vector<32x16xbf16>, vector<16x32xbf16>, vector<32x32xf32> -> vector<32x32xf32>
    %14 = arith.addf %7, %13 : vector<32x32xf32>
    %c0_17 = arith.constant 0 : index
    %c2 = arith.constant 2 : index
    %c0_18 = arith.constant 0 : index
    %15 = vector.load %arg1[%c0_17, %c2, %c0_18] : memref<1x37x16xf32, #tpu.memory_space<vmem>>, vector<1x32x16xf32>
    %16 = vector.shape_cast %15 : vector<1x32x16xf32> to vector<32x16xf32>
    %17 = arith.truncf %16 : vector<32x16xf32> to vector<32x16xbf16>
    %c0_19 = arith.constant 0 : index
    %c2_20 = arith.constant 2 : index
    %c0_21 = arith.constant 0 : index
    %c0_22 = arith.constant 0 : index
    %18 = vector.load %arg2[%c0_19, %c2_20, %c0_21, %c0_22] : memref<4x6x16x32xbf16, #tpu.memory_space<vmem>>, vector<1x1x16x32xbf16>
    %19 = vector.shape_cast %18 : vector<1x1x16x32xbf16> to vector<16x32xbf16>
    %cst_23 = arith.constant dense<0.000000e+00> : vector<32x32xf32>
    %20 = tpu.matmul %17, %19, %cst_23 {dimension_numbers = #tpu.dot_dimension_numbers<[1], [0], [0], [1], [0, 0, 1, 1], [], []>} : vector<32x16xbf16>, vector<16x32xbf16>, vector<32x32xf32> -> vector<32x32xf32>
    %21 = arith.addf %14, %20 : vector<32x32xf32>
    %c0_24 = arith.constant 0 : index
    %c3 = arith.constant 3 : index
    %c0_25 = arith.constant 0 : index
    %22 = vector.load %arg1[%c0_24, %c3, %c0_25] : memref<1x37x16xf32, #tpu.memory_space<vmem>>, vector<1x32x16xf32>
    %23 = vector.shape_cast %22 : vector<1x32x16xf32> to vector<32x16xf32>
    %24 = arith.truncf %23 : vector<32x16xf32> to vector<32x16xbf16>
    %c0_26 = arith.constant 0 : index
    %c3_27 = arith.constant 3 : index
    %c0_28 = arith.constant 0 : index
    %c0_29 = arith.constant 0 : index
    %25 = vector.load %arg2[%c0_26, %c3_27, %c0_28, %c0_29] : memref<4x6x16x32xbf16, #tpu.memory_space<vmem>>, vector<1x1x16x32xbf16>
    %26 = vector.shape_cast %25 : vector<1x1x16x32xbf16> to vector<16x32xbf16>
    %cst_30 = arith.constant dense<0.000000e+00> : vector<32x32xf32>
    %27 = tpu.matmul %24, %26, %cst_30 {dimension_numbers = #tpu.dot_dimension_numbers<[1], [0], [0], [1], [0, 0, 1, 1], [], []>} : vector<32x16xbf16>, vector<16x32xbf16>, vector<32x32xf32> -> vector<32x32xf32>
    %28 = arith.addf %21, %27 : vector<32x32xf32>
    %c0_31 = arith.constant 0 : index
    %c4 = arith.constant 4 : index
    %c0_32 = arith.constant 0 : index
    %29 = vector.load %arg1[%c0_31, %c4, %c0_32] : memref<1x37x16xf32, #tpu.memory_space<vmem>>, vector<1x32x16xf32>
    %30 = vector.shape_cast %29 : vector<1x32x16xf32> to vector<32x16xf32>
    %31 = arith.truncf %30 : vector<32x16xf32> to vector<32x16xbf16>
    %c0_33 = arith.constant 0 : index
    %c4_34 = arith.constant 4 : index
    %c0_35 = arith.constant 0 : index
    %c0_36 = arith.constant 0 : index
    %32 = vector.load %arg2[%c0_33, %c4_34, %c0_35, %c0_36] : memref<4x6x16x32xbf16, #tpu.memory_space<vmem>>, vector<1x1x16x32xbf16>
    %33 = vector.shape_cast %32 : vector<1x1x16x32xbf16> to vector<16x32xbf16>
    %cst_37 = arith.constant dense<0.000000e+00> : vector<32x32xf32>
    %34 = tpu.matmul %31, %33, %cst_37 {dimension_numbers = #tpu.dot_dimension_numbers<[1], [0], [0], [1], [0, 0, 1, 1], [], []>} : vector<32x16xbf16>, vector<16x32xbf16>, vector<32x32xf32> -> vector<32x32xf32>
    %35 = arith.addf %28, %34 : vector<32x32xf32>
    %c0_38 = arith.constant 0 : index
    %c5 = arith.constant 5 : index
    %c0_39 = arith.constant 0 : index
    %36 = vector.load %arg1[%c0_38, %c5, %c0_39] : memref<1x37x16xf32, #tpu.memory_space<vmem>>, vector<1x32x16xf32>
    %37 = vector.shape_cast %36 : vector<1x32x16xf32> to vector<32x16xf32>
    %38 = arith.truncf %37 : vector<32x16xf32> to vector<32x16xbf16>
    %c0_40 = arith.constant 0 : index
    %c5_41 = arith.constant 5 : index
    %c0_42 = arith.constant 0 : index
    %c0_43 = arith.constant 0 : index
    %39 = vector.load %arg2[%c0_40, %c5_41, %c0_42, %c0_43] : memref<4x6x16x32xbf16, #tpu.memory_space<vmem>>, vector<1x1x16x32xbf16>
    %40 = vector.shape_cast %39 : vector<1x1x16x32xbf16> to vector<16x32xbf16>
    %cst_44 = arith.constant dense<0.000000e+00> : vector<32x32xf32>
    %41 = tpu.matmul %38, %40, %cst_44 {dimension_numbers = #tpu.dot_dimension_numbers<[1], [0], [0], [1], [0, 0, 1, 1], [], []>} : vector<32x16xbf16>, vector<16x32xbf16>, vector<32x32xf32> -> vector<32x32xf32>
    %42 = arith.addf %35, %41 : vector<32x32xf32>
    %43 = vector.broadcast %0 : vector<1x32xf32> to vector<32x32xf32>
    %44 = arith.mulf %42, %43 : vector<32x32xf32>
    %45 = vector.broadcast %1 : vector<1x32xf32> to vector<32x32xf32>
    %46 = arith.addf %44, %45 : vector<32x32xf32>
    %c0_45 = arith.constant 0 : index
    %c0_46 = arith.constant 0 : index
    %c0_47 = arith.constant 0 : index
    %47 = vector.load %arg1[%c0_45, %c0_46, %c0_47] : memref<1x37x16xf32, #tpu.memory_space<vmem>>, vector<1x32x16xf32>
    %48 = vector.shape_cast %47 : vector<1x32x16xf32> to vector<32x16xf32>
    %49 = arith.truncf %48 : vector<32x16xf32> to vector<32x16xbf16>
    %c1_48 = arith.constant 1 : index
    %c0_49 = arith.constant 0 : index
    %c0_50 = arith.constant 0 : index
    %c0_51 = arith.constant 0 : index
    %50 = vector.load %arg2[%c1_48, %c0_49, %c0_50, %c0_51] : memref<4x6x16x32xbf16, #tpu.memory_space<vmem>>, vector<1x1x16x32xbf16>
    %51 = vector.shape_cast %50 : vector<1x1x16x32xbf16> to vector<16x32xbf16>
    %cst_52 = arith.constant dense<0.000000e+00> : vector<32x32xf32>
    %52 = tpu.matmul %49, %51, %cst_52 {dimension_numbers = #tpu.dot_dimension_numbers<[1], [0], [0], [1], [0, 0, 1, 1], [], []>} : vector<32x16xbf16>, vector<16x32xbf16>, vector<32x32xf32> -> vector<32x32xf32>
    %c0_53 = arith.constant 0 : index
    %c1_54 = arith.constant 1 : index
    %c0_55 = arith.constant 0 : index
    %53 = vector.load %arg1[%c0_53, %c1_54, %c0_55] : memref<1x37x16xf32, #tpu.memory_space<vmem>>, vector<1x32x16xf32>
    %54 = vector.shape_cast %53 : vector<1x32x16xf32> to vector<32x16xf32>
    %55 = arith.truncf %54 : vector<32x16xf32> to vector<32x16xbf16>
    %c1_56 = arith.constant 1 : index
    %c1_57 = arith.constant 1 : index
    %c0_58 = arith.constant 0 : index
    %c0_59 = arith.constant 0 : index
    %56 = vector.load %arg2[%c1_56, %c1_57, %c0_58, %c0_59] : memref<4x6x16x32xbf16, #tpu.memory_space<vmem>>, vector<1x1x16x32xbf16>
    %57 = vector.shape_cast %56 : vector<1x1x16x32xbf16> to vector<16x32xbf16>
    %cst_60 = arith.constant dense<0.000000e+00> : vector<32x32xf32>
    %58 = tpu.matmul %55, %57, %cst_60 {dimension_numbers = #tpu.dot_dimension_numbers<[1], [0], [0], [1], [0, 0, 1, 1], [], []>} : vector<32x16xbf16>, vector<16x32xbf16>, vector<32x32xf32> -> vector<32x32xf32>
    %59 = arith.addf %52, %58 : vector<32x32xf32>
    %c0_61 = arith.constant 0 : index
    %c2_62 = arith.constant 2 : index
    %c0_63 = arith.constant 0 : index
    %60 = vector.load %arg1[%c0_61, %c2_62, %c0_63] : memref<1x37x16xf32, #tpu.memory_space<vmem>>, vector<1x32x16xf32>
    %61 = vector.shape_cast %60 : vector<1x32x16xf32> to vector<32x16xf32>
    %62 = arith.truncf %61 : vector<32x16xf32> to vector<32x16xbf16>
    %c1_64 = arith.constant 1 : index
    %c2_65 = arith.constant 2 : index
    %c0_66 = arith.constant 0 : index
    %c0_67 = arith.constant 0 : index
    %63 = vector.load %arg2[%c1_64, %c2_65, %c0_66, %c0_67] : memref<4x6x16x32xbf16, #tpu.memory_space<vmem>>, vector<1x1x16x32xbf16>
    %64 = vector.shape_cast %63 : vector<1x1x16x32xbf16> to vector<16x32xbf16>
    %cst_68 = arith.constant dense<0.000000e+00> : vector<32x32xf32>
    %65 = tpu.matmul %62, %64, %cst_68 {dimension_numbers = #tpu.dot_dimension_numbers<[1], [0], [0], [1], [0, 0, 1, 1], [], []>} : vector<32x16xbf16>, vector<16x32xbf16>, vector<32x32xf32> -> vector<32x32xf32>
    %66 = arith.addf %59, %65 : vector<32x32xf32>
    %c0_69 = arith.constant 0 : index
    %c3_70 = arith.constant 3 : index
    %c0_71 = arith.constant 0 : index
    %67 = vector.load %arg1[%c0_69, %c3_70, %c0_71] : memref<1x37x16xf32, #tpu.memory_space<vmem>>, vector<1x32x16xf32>
    %68 = vector.shape_cast %67 : vector<1x32x16xf32> to vector<32x16xf32>
    %69 = arith.truncf %68 : vector<32x16xf32> to vector<32x16xbf16>
    %c1_72 = arith.constant 1 : index
    %c3_73 = arith.constant 3 : index
    %c0_74 = arith.constant 0 : index
    %c0_75 = arith.constant 0 : index
    %70 = vector.load %arg2[%c1_72, %c3_73, %c0_74, %c0_75] : memref<4x6x16x32xbf16, #tpu.memory_space<vmem>>, vector<1x1x16x32xbf16>
    %71 = vector.shape_cast %70 : vector<1x1x16x32xbf16> to vector<16x32xbf16>
    %cst_76 = arith.constant dense<0.000000e+00> : vector<32x32xf32>
    %72 = tpu.matmul %69, %71, %cst_76 {dimension_numbers = #tpu.dot_dimension_numbers<[1], [0], [0], [1], [0, 0, 1, 1], [], []>} : vector<32x16xbf16>, vector<16x32xbf16>, vector<32x32xf32> -> vector<32x32xf32>
    %73 = arith.addf %66, %72 : vector<32x32xf32>
    %c0_77 = arith.constant 0 : index
    %c4_78 = arith.constant 4 : index
    %c0_79 = arith.constant 0 : index
    %74 = vector.load %arg1[%c0_77, %c4_78, %c0_79] : memref<1x37x16xf32, #tpu.memory_space<vmem>>, vector<1x32x16xf32>
    %75 = vector.shape_cast %74 : vector<1x32x16xf32> to vector<32x16xf32>
    %76 = arith.truncf %75 : vector<32x16xf32> to vector<32x16xbf16>
    %c1_80 = arith.constant 1 : index
    %c4_81 = arith.constant 4 : index
    %c0_82 = arith.constant 0 : index
    %c0_83 = arith.constant 0 : index
    %77 = vector.load %arg2[%c1_80, %c4_81, %c0_82, %c0_83] : memref<4x6x16x32xbf16, #tpu.memory_space<vmem>>, vector<1x1x16x32xbf16>
    %78 = vector.shape_cast %77 : vector<1x1x16x32xbf16> to vector<16x32xbf16>
    %cst_84 = arith.constant dense<0.000000e+00> : vector<32x32xf32>
    %79 = tpu.matmul %76, %78, %cst_84 {dimension_numbers = #tpu.dot_dimension_numbers<[1], [0], [0], [1], [0, 0, 1, 1], [], []>} : vector<32x16xbf16>, vector<16x32xbf16>, vector<32x32xf32> -> vector<32x32xf32>
    %80 = arith.addf %73, %79 : vector<32x32xf32>
    %c0_85 = arith.constant 0 : index
    %c5_86 = arith.constant 5 : index
    %c0_87 = arith.constant 0 : index
    %81 = vector.load %arg1[%c0_85, %c5_86, %c0_87] : memref<1x37x16xf32, #tpu.memory_space<vmem>>, vector<1x32x16xf32>
    %82 = vector.shape_cast %81 : vector<1x32x16xf32> to vector<32x16xf32>
    %83 = arith.truncf %82 : vector<32x16xf32> to vector<32x16xbf16>
    %c1_88 = arith.constant 1 : index
    %c5_89 = arith.constant 5 : index
    %c0_90 = arith.constant 0 : index
    %c0_91 = arith.constant 0 : index
    %84 = vector.load %arg2[%c1_88, %c5_89, %c0_90, %c0_91] : memref<4x6x16x32xbf16, #tpu.memory_space<vmem>>, vector<1x1x16x32xbf16>
    %85 = vector.shape_cast %84 : vector<1x1x16x32xbf16> to vector<16x32xbf16>
    %cst_92 = arith.constant dense<0.000000e+00> : vector<32x32xf32>
    %86 = tpu.matmul %83, %85, %cst_92 {dimension_numbers = #tpu.dot_dimension_numbers<[1], [0], [0], [1], [0, 0, 1, 1], [], []>} : vector<32x16xbf16>, vector<16x32xbf16>, vector<32x32xf32> -> vector<32x32xf32>
    %87 = arith.addf %80, %86 : vector<32x32xf32>
    %88 = vector.broadcast %0 : vector<1x32xf32> to vector<32x32xf32>
    %89 = arith.mulf %87, %88 : vector<32x32xf32>
    %90 = vector.broadcast %1 : vector<1x32xf32> to vector<32x32xf32>
    %91 = arith.addf %89, %90 : vector<32x32xf32>
    %92 = arith.maximumf %46, %91 : vector<32x32xf32>
    %c0_93 = arith.constant 0 : index
    %c0_94 = arith.constant 0 : index
    %c0_95 = arith.constant 0 : index
    %93 = vector.load %arg1[%c0_93, %c0_94, %c0_95] : memref<1x37x16xf32, #tpu.memory_space<vmem>>, vector<1x32x16xf32>
    %94 = vector.shape_cast %93 : vector<1x32x16xf32> to vector<32x16xf32>
    %95 = arith.truncf %94 : vector<32x16xf32> to vector<32x16xbf16>
    %c2_96 = arith.constant 2 : index
    %c0_97 = arith.constant 0 : index
    %c0_98 = arith.constant 0 : index
    %c0_99 = arith.constant 0 : index
    %96 = vector.load %arg2[%c2_96, %c0_97, %c0_98, %c0_99] : memref<4x6x16x32xbf16, #tpu.memory_space<vmem>>, vector<1x1x16x32xbf16>
    %97 = vector.shape_cast %96 : vector<1x1x16x32xbf16> to vector<16x32xbf16>
    %cst_100 = arith.constant dense<0.000000e+00> : vector<32x32xf32>
    %98 = tpu.matmul %95, %97, %cst_100 {dimension_numbers = #tpu.dot_dimension_numbers<[1], [0], [0], [1], [0, 0, 1, 1], [], []>} : vector<32x16xbf16>, vector<16x32xbf16>, vector<32x32xf32> -> vector<32x32xf32>
    %c0_101 = arith.constant 0 : index
    %c1_102 = arith.constant 1 : index
    %c0_103 = arith.constant 0 : index
    %99 = vector.load %arg1[%c0_101, %c1_102, %c0_103] : memref<1x37x16xf32, #tpu.memory_space<vmem>>, vector<1x32x16xf32>
    %100 = vector.shape_cast %99 : vector<1x32x16xf32> to vector<32x16xf32>
    %101 = arith.truncf %100 : vector<32x16xf32> to vector<32x16xbf16>
    %c2_104 = arith.constant 2 : index
    %c1_105 = arith.constant 1 : index
    %c0_106 = arith.constant 0 : index
    %c0_107 = arith.constant 0 : index
    %102 = vector.load %arg2[%c2_104, %c1_105, %c0_106, %c0_107] : memref<4x6x16x32xbf16, #tpu.memory_space<vmem>>, vector<1x1x16x32xbf16>
    %103 = vector.shape_cast %102 : vector<1x1x16x32xbf16> to vector<16x32xbf16>
    %cst_108 = arith.constant dense<0.000000e+00> : vector<32x32xf32>
    %104 = tpu.matmul %101, %103, %cst_108 {dimension_numbers = #tpu.dot_dimension_numbers<[1], [0], [0], [1], [0, 0, 1, 1], [], []>} : vector<32x16xbf16>, vector<16x32xbf16>, vector<32x32xf32> -> vector<32x32xf32>
    %105 = arith.addf %98, %104 : vector<32x32xf32>
    %c0_109 = arith.constant 0 : index
    %c2_110 = arith.constant 2 : index
    %c0_111 = arith.constant 0 : index
    %106 = vector.load %arg1[%c0_109, %c2_110, %c0_111] : memref<1x37x16xf32, #tpu.memory_space<vmem>>, vector<1x32x16xf32>
    %107 = vector.shape_cast %106 : vector<1x32x16xf32> to vector<32x16xf32>
    %108 = arith.truncf %107 : vector<32x16xf32> to vector<32x16xbf16>
    %c2_112 = arith.constant 2 : index
    %c2_113 = arith.constant 2 : index
    %c0_114 = arith.constant 0 : index
    %c0_115 = arith.constant 0 : index
    %109 = vector.load %arg2[%c2_112, %c2_113, %c0_114, %c0_115] : memref<4x6x16x32xbf16, #tpu.memory_space<vmem>>, vector<1x1x16x32xbf16>
    %110 = vector.shape_cast %109 : vector<1x1x16x32xbf16> to vector<16x32xbf16>
    %cst_116 = arith.constant dense<0.000000e+00> : vector<32x32xf32>
    %111 = tpu.matmul %108, %110, %cst_116 {dimension_numbers = #tpu.dot_dimension_numbers<[1], [0], [0], [1], [0, 0, 1, 1], [], []>} : vector<32x16xbf16>, vector<16x32xbf16>, vector<32x32xf32> -> vector<32x32xf32>
    %112 = arith.addf %105, %111 : vector<32x32xf32>
    %c0_117 = arith.constant 0 : index
    %c3_118 = arith.constant 3 : index
    %c0_119 = arith.constant 0 : index
    %113 = vector.load %arg1[%c0_117, %c3_118, %c0_119] : memref<1x37x16xf32, #tpu.memory_space<vmem>>, vector<1x32x16xf32>
    %114 = vector.shape_cast %113 : vector<1x32x16xf32> to vector<32x16xf32>
    %115 = arith.truncf %114 : vector<32x16xf32> to vector<32x16xbf16>
    %c2_120 = arith.constant 2 : index
    %c3_121 = arith.constant 3 : index
    %c0_122 = arith.constant 0 : index
    %c0_123 = arith.constant 0 : index
    %116 = vector.load %arg2[%c2_120, %c3_121, %c0_122, %c0_123] : memref<4x6x16x32xbf16, #tpu.memory_space<vmem>>, vector<1x1x16x32xbf16>
    %117 = vector.shape_cast %116 : vector<1x1x16x32xbf16> to vector<16x32xbf16>
    %cst_124 = arith.constant dense<0.000000e+00> : vector<32x32xf32>
    %118 = tpu.matmul %115, %117, %cst_124 {dimension_numbers = #tpu.dot_dimension_numbers<[1], [0], [0], [1], [0, 0, 1, 1], [], []>} : vector<32x16xbf16>, vector<16x32xbf16>, vector<32x32xf32> -> vector<32x32xf32>
    %119 = arith.addf %112, %118 : vector<32x32xf32>
    %c0_125 = arith.constant 0 : index
    %c4_126 = arith.constant 4 : index
    %c0_127 = arith.constant 0 : index
    %120 = vector.load %arg1[%c0_125, %c4_126, %c0_127] : memref<1x37x16xf32, #tpu.memory_space<vmem>>, vector<1x32x16xf32>
    %121 = vector.shape_cast %120 : vector<1x32x16xf32> to vector<32x16xf32>
    %122 = arith.truncf %121 : vector<32x16xf32> to vector<32x16xbf16>
    %c2_128 = arith.constant 2 : index
    %c4_129 = arith.constant 4 : index
    %c0_130 = arith.constant 0 : index
    %c0_131 = arith.constant 0 : index
    %123 = vector.load %arg2[%c2_128, %c4_129, %c0_130, %c0_131] : memref<4x6x16x32xbf16, #tpu.memory_space<vmem>>, vector<1x1x16x32xbf16>
    %124 = vector.shape_cast %123 : vector<1x1x16x32xbf16> to vector<16x32xbf16>
    %cst_132 = arith.constant dense<0.000000e+00> : vector<32x32xf32>
    %125 = tpu.matmul %122, %124, %cst_132 {dimension_numbers = #tpu.dot_dimension_numbers<[1], [0], [0], [1], [0, 0, 1, 1], [], []>} : vector<32x16xbf16>, vector<16x32xbf16>, vector<32x32xf32> -> vector<32x32xf32>
    %126 = arith.addf %119, %125 : vector<32x32xf32>
    %c0_133 = arith.constant 0 : index
    %c5_134 = arith.constant 5 : index
    %c0_135 = arith.constant 0 : index
    %127 = vector.load %arg1[%c0_133, %c5_134, %c0_135] : memref<1x37x16xf32, #tpu.memory_space<vmem>>, vector<1x32x16xf32>
    %128 = vector.shape_cast %127 : vector<1x32x16xf32> to vector<32x16xf32>
    %129 = arith.truncf %128 : vector<32x16xf32> to vector<32x16xbf16>
    %c2_136 = arith.constant 2 : index
    %c5_137 = arith.constant 5 : index
    %c0_138 = arith.constant 0 : index
    %c0_139 = arith.constant 0 : index
    %130 = vector.load %arg2[%c2_136, %c5_137, %c0_138, %c0_139] : memref<4x6x16x32xbf16, #tpu.memory_space<vmem>>, vector<1x1x16x32xbf16>
    %131 = vector.shape_cast %130 : vector<1x1x16x32xbf16> to vector<16x32xbf16>
    %cst_140 = arith.constant dense<0.000000e+00> : vector<32x32xf32>
    %132 = tpu.matmul %129, %131, %cst_140 {dimension_numbers = #tpu.dot_dimension_numbers<[1], [0], [0], [1], [0, 0, 1, 1], [], []>} : vector<32x16xbf16>, vector<16x32xbf16>, vector<32x32xf32> -> vector<32x32xf32>
    %133 = arith.addf %126, %132 : vector<32x32xf32>
    %134 = vector.broadcast %0 : vector<1x32xf32> to vector<32x32xf32>
    %135 = arith.mulf %133, %134 : vector<32x32xf32>
    %136 = vector.broadcast %1 : vector<1x32xf32> to vector<32x32xf32>
    %137 = arith.addf %135, %136 : vector<32x32xf32>
    %138 = arith.maximumf %92, %137 : vector<32x32xf32>
    %c0_141 = arith.constant 0 : index
    %c0_142 = arith.constant 0 : index
    %c0_143 = arith.constant 0 : index
    %139 = vector.load %arg1[%c0_141, %c0_142, %c0_143] : memref<1x37x16xf32, #tpu.memory_space<vmem>>, vector<1x32x16xf32>
    %140 = vector.shape_cast %139 : vector<1x32x16xf32> to vector<32x16xf32>
    %141 = arith.truncf %140 : vector<32x16xf32> to vector<32x16xbf16>
    %c3_144 = arith.constant 3 : index
    %c0_145 = arith.constant 0 : index
    %c0_146 = arith.constant 0 : index
    %c0_147 = arith.constant 0 : index
    %142 = vector.load %arg2[%c3_144, %c0_145, %c0_146, %c0_147] : memref<4x6x16x32xbf16, #tpu.memory_space<vmem>>, vector<1x1x16x32xbf16>
    %143 = vector.shape_cast %142 : vector<1x1x16x32xbf16> to vector<16x32xbf16>
    %cst_148 = arith.constant dense<0.000000e+00> : vector<32x32xf32>
    %144 = tpu.matmul %141, %143, %cst_148 {dimension_numbers = #tpu.dot_dimension_numbers<[1], [0], [0], [1], [0, 0, 1, 1], [], []>} : vector<32x16xbf16>, vector<16x32xbf16>, vector<32x32xf32> -> vector<32x32xf32>
    %c0_149 = arith.constant 0 : index
    %c1_150 = arith.constant 1 : index
    %c0_151 = arith.constant 0 : index
    %145 = vector.load %arg1[%c0_149, %c1_150, %c0_151] : memref<1x37x16xf32, #tpu.memory_space<vmem>>, vector<1x32x16xf32>
    %146 = vector.shape_cast %145 : vector<1x32x16xf32> to vector<32x16xf32>
    %147 = arith.truncf %146 : vector<32x16xf32> to vector<32x16xbf16>
    %c3_152 = arith.constant 3 : index
    %c1_153 = arith.constant 1 : index
    %c0_154 = arith.constant 0 : index
    %c0_155 = arith.constant 0 : index
    %148 = vector.load %arg2[%c3_152, %c1_153, %c0_154, %c0_155] : memref<4x6x16x32xbf16, #tpu.memory_space<vmem>>, vector<1x1x16x32xbf16>
    %149 = vector.shape_cast %148 : vector<1x1x16x32xbf16> to vector<16x32xbf16>
    %cst_156 = arith.constant dense<0.000000e+00> : vector<32x32xf32>
    %150 = tpu.matmul %147, %149, %cst_156 {dimension_numbers = #tpu.dot_dimension_numbers<[1], [0], [0], [1], [0, 0, 1, 1], [], []>} : vector<32x16xbf16>, vector<16x32xbf16>, vector<32x32xf32> -> vector<32x32xf32>
    %151 = arith.addf %144, %150 : vector<32x32xf32>
    %c0_157 = arith.constant 0 : index
    %c2_158 = arith.constant 2 : index
    %c0_159 = arith.constant 0 : index
    %152 = vector.load %arg1[%c0_157, %c2_158, %c0_159] : memref<1x37x16xf32, #tpu.memory_space<vmem>>, vector<1x32x16xf32>
    %153 = vector.shape_cast %152 : vector<1x32x16xf32> to vector<32x16xf32>
    %154 = arith.truncf %153 : vector<32x16xf32> to vector<32x16xbf16>
    %c3_160 = arith.constant 3 : index
    %c2_161 = arith.constant 2 : index
    %c0_162 = arith.constant 0 : index
    %c0_163 = arith.constant 0 : index
    %155 = vector.load %arg2[%c3_160, %c2_161, %c0_162, %c0_163] : memref<4x6x16x32xbf16, #tpu.memory_space<vmem>>, vector<1x1x16x32xbf16>
    %156 = vector.shape_cast %155 : vector<1x1x16x32xbf16> to vector<16x32xbf16>
    %cst_164 = arith.constant dense<0.000000e+00> : vector<32x32xf32>
    %157 = tpu.matmul %154, %156, %cst_164 {dimension_numbers = #tpu.dot_dimension_numbers<[1], [0], [0], [1], [0, 0, 1, 1], [], []>} : vector<32x16xbf16>, vector<16x32xbf16>, vector<32x32xf32> -> vector<32x32xf32>
    %158 = arith.addf %151, %157 : vector<32x32xf32>
    %c0_165 = arith.constant 0 : index
    %c3_166 = arith.constant 3 : index
    %c0_167 = arith.constant 0 : index
    %159 = vector.load %arg1[%c0_165, %c3_166, %c0_167] : memref<1x37x16xf32, #tpu.memory_space<vmem>>, vector<1x32x16xf32>
    %160 = vector.shape_cast %159 : vector<1x32x16xf32> to vector<32x16xf32>
    %161 = arith.truncf %160 : vector<32x16xf32> to vector<32x16xbf16>
    %c3_168 = arith.constant 3 : index
    %c3_169 = arith.constant 3 : index
    %c0_170 = arith.constant 0 : index
    %c0_171 = arith.constant 0 : index
    %162 = vector.load %arg2[%c3_168, %c3_169, %c0_170, %c0_171] : memref<4x6x16x32xbf16, #tpu.memory_space<vmem>>, vector<1x1x16x32xbf16>
    %163 = vector.shape_cast %162 : vector<1x1x16x32xbf16> to vector<16x32xbf16>
    %cst_172 = arith.constant dense<0.000000e+00> : vector<32x32xf32>
    %164 = tpu.matmul %161, %163, %cst_172 {dimension_numbers = #tpu.dot_dimension_numbers<[1], [0], [0], [1], [0, 0, 1, 1], [], []>} : vector<32x16xbf16>, vector<16x32xbf16>, vector<32x32xf32> -> vector<32x32xf32>
    %165 = arith.addf %158, %164 : vector<32x32xf32>
    %c0_173 = arith.constant 0 : index
    %c4_174 = arith.constant 4 : index
    %c0_175 = arith.constant 0 : index
    %166 = vector.load %arg1[%c0_173, %c4_174, %c0_175] : memref<1x37x16xf32, #tpu.memory_space<vmem>>, vector<1x32x16xf32>
    %167 = vector.shape_cast %166 : vector<1x32x16xf32> to vector<32x16xf32>
    %168 = arith.truncf %167 : vector<32x16xf32> to vector<32x16xbf16>
    %c3_176 = arith.constant 3 : index
    %c4_177 = arith.constant 4 : index
    %c0_178 = arith.constant 0 : index
    %c0_179 = arith.constant 0 : index
    %169 = vector.load %arg2[%c3_176, %c4_177, %c0_178, %c0_179] : memref<4x6x16x32xbf16, #tpu.memory_space<vmem>>, vector<1x1x16x32xbf16>
    %170 = vector.shape_cast %169 : vector<1x1x16x32xbf16> to vector<16x32xbf16>
    %cst_180 = arith.constant dense<0.000000e+00> : vector<32x32xf32>
    %171 = tpu.matmul %168, %170, %cst_180 {dimension_numbers = #tpu.dot_dimension_numbers<[1], [0], [0], [1], [0, 0, 1, 1], [], []>} : vector<32x16xbf16>, vector<16x32xbf16>, vector<32x32xf32> -> vector<32x32xf32>
    %172 = arith.addf %165, %171 : vector<32x32xf32>
    %c0_181 = arith.constant 0 : index
    %c5_182 = arith.constant 5 : index
    %c0_183 = arith.constant 0 : index
    %173 = vector.load %arg1[%c0_181, %c5_182, %c0_183] : memref<1x37x16xf32, #tpu.memory_space<vmem>>, vector<1x32x16xf32>
    %174 = vector.shape_cast %173 : vector<1x32x16xf32> to vector<32x16xf32>
    %175 = arith.truncf %174 : vector<32x16xf32> to vector<32x16xbf16>
    %c3_184 = arith.constant 3 : index
    %c5_185 = arith.constant 5 : index
    %c0_186 = arith.constant 0 : index
    %c0_187 = arith.constant 0 : index
    %176 = vector.load %arg2[%c3_184, %c5_185, %c0_186, %c0_187] : memref<4x6x16x32xbf16, #tpu.memory_space<vmem>>, vector<1x1x16x32xbf16>
    %177 = vector.shape_cast %176 : vector<1x1x16x32xbf16> to vector<16x32xbf16>
    %cst_188 = arith.constant dense<0.000000e+00> : vector<32x32xf32>
    %178 = tpu.matmul %175, %177, %cst_188 {dimension_numbers = #tpu.dot_dimension_numbers<[1], [0], [0], [1], [0, 0, 1, 1], [], []>} : vector<32x16xbf16>, vector<16x32xbf16>, vector<32x32xf32> -> vector<32x32xf32>
    %179 = arith.addf %172, %178 : vector<32x32xf32>
    %180 = vector.broadcast %0 : vector<1x32xf32> to vector<32x32xf32>
    %181 = arith.mulf %179, %180 : vector<32x32xf32>
    %182 = vector.broadcast %1 : vector<1x32xf32> to vector<32x32xf32>
    %183 = arith.addf %181, %182 : vector<32x32xf32>
    %184 = arith.maximumf %138, %183 : vector<32x32xf32>
    %cst_189 = arith.constant 0.000000e+00 : f32
    %185 = vector.broadcast %cst_189 : f32 to vector<32x32xf32>
    %186 = arith.maximumf %184, %185 : vector<32x32xf32>
    %cst_190 = arith.constant 0.000000e+00 : f32
    %187 = vector.broadcast %cst_190 : f32 to vector<48x32xf32>
    %c0_191 = arith.constant 0 : index
    %c0_192 = arith.constant 0 : index
    %188 = vector.load %arg11[%c0_191, %c0_192] : memref<48x32xf32, #tpu.memory_space<vmem>>, vector<48x32xf32>
    tpu.vector_store %arg11[%c0_191, %c0_192], %187 {strides = array<i32>} : memref<48x32xf32, #tpu.memory_space<vmem>>, vector<48x32xf32>,
    %c8 = arith.constant 8 : index
    %c0_193 = arith.constant 0 : index
    %189 = vector.load %arg11[%c8, %c0_193] : memref<48x32xf32, #tpu.memory_space<vmem>>, vector<32x32xf32>
    tpu.vector_store %arg11[%c8, %c0_193], %186 {strides = array<i32>} : memref<48x32xf32, #tpu.memory_space<vmem>>, vector<32x32xf32>,
    %c7 = arith.constant 7 : index
    %c0_194 = arith.constant 0 : index
    %190 = vector.load %arg11[%c7, %c0_194] : memref<48x32xf32, #tpu.memory_space<vmem>>, vector<32x32xf32>
    %191 = arith.truncf %190 : vector<32x32xf32> to vector<32x32xbf16>
    %c0_195 = arith.constant 0 : index
    %c0_196 = arith.constant 0 : index
    %c0_197 = arith.constant 0 : index
    %192 = vector.load %arg5[%c0_195, %c0_196, %c0_197] : memref<3x32x32xbf16, #tpu.memory_space<vmem>>, vector<1x32x32xbf16>
    %193 = vector.shape_cast %192 : vector<1x32x32xbf16> to vector<32x32xbf16>
    %cst_198 = arith.constant dense<0.000000e+00> : vector<32x32xf32>
    %194 = tpu.matmul %191, %193, %cst_198 {dimension_numbers = #tpu.dot_dimension_numbers<[1], [0], [0], [1], [0, 0, 1, 1], [], []>} : vector<32x32xbf16>, vector<32x32xbf16>, vector<32x32xf32> -> vector<32x32xf32>
    %c8_199 = arith.constant 8 : index
    %c0_200 = arith.constant 0 : index
    %195 = vector.load %arg11[%c8_199, %c0_200] : memref<48x32xf32, #tpu.memory_space<vmem>>, vector<32x32xf32>
    %196 = arith.truncf %195 : vector<32x32xf32> to vector<32x32xbf16>
    %c1_201 = arith.constant 1 : index
    %c0_202 = arith.constant 0 : index
    %c0_203 = arith.constant 0 : index
    %197 = vector.load %arg5[%c1_201, %c0_202, %c0_203] : memref<3x32x32xbf16, #tpu.memory_space<vmem>>, vector<1x32x32xbf16>
    %198 = vector.shape_cast %197 : vector<1x32x32xbf16> to vector<32x32xbf16>
    %cst_204 = arith.constant dense<0.000000e+00> : vector<32x32xf32>
    %199 = tpu.matmul %196, %198, %cst_204 {dimension_numbers = #tpu.dot_dimension_numbers<[1], [0], [0], [1], [0, 0, 1, 1], [], []>} : vector<32x32xbf16>, vector<32x32xbf16>, vector<32x32xf32> -> vector<32x32xf32>
    %200 = arith.addf %194, %199 : vector<32x32xf32>
    %c9 = arith.constant 9 : index
    %c0_205 = arith.constant 0 : index
    %201 = vector.load %arg11[%c9, %c0_205] : memref<48x32xf32, #tpu.memory_space<vmem>>, vector<32x32xf32>
    %202 = arith.truncf %201 : vector<32x32xf32> to vector<32x32xbf16>
    %c2_206 = arith.constant 2 : index
    %c0_207 = arith.constant 0 : index
    %c0_208 = arith.constant 0 : index
    %203 = vector.load %arg5[%c2_206, %c0_207, %c0_208] : memref<3x32x32xbf16, #tpu.memory_space<vmem>>, vector<1x32x32xbf16>
    %204 = vector.shape_cast %203 : vector<1x32x32xbf16> to vector<32x32xbf16>
    %cst_209 = arith.constant dense<0.000000e+00> : vector<32x32xf32>
    %205 = tpu.matmul %202, %204, %cst_209 {dimension_numbers = #tpu.dot_dimension_numbers<[1], [0], [0], [1], [0, 0, 1, 1], [], []>} : vector<32x32xbf16>, vector<32x32xbf16>, vector<32x32xf32> -> vector<32x32xf32>
    %206 = arith.addf %200, %205 : vector<32x32xf32>
    %c0_210 = arith.constant 0 : index
    %c0_211 = arith.constant 0 : index
    %207 = vector.load %arg6[%c0_210, %c0_211] : memref<1x32xf32, #tpu.memory_space<vmem>>, vector<1x32xf32>
    %208 = vector.broadcast %207 : vector<1x32xf32> to vector<32x32xf32>
    %209 = arith.mulf %206, %208 : vector<32x32xf32>
    %c0_212 = arith.constant 0 : index
    %c0_213 = arith.constant 0 : index
    %210 = vector.load %arg7[%c0_212, %c0_213] : memref<1x32xf32, #tpu.memory_space<vmem>>, vector<1x32xf32>
    %211 = vector.broadcast %210 : vector<1x32xf32> to vector<32x32xf32>
    %212 = arith.addf %209, %211 : vector<32x32xf32>
    %cst_214 = arith.constant 0.000000e+00 : f32
    %213 = vector.broadcast %cst_214 : f32 to vector<32x32xf32>
    %214 = arith.maximumf %212, %213 : vector<32x32xf32>
    %cst_215 = arith.constant 0.000000e+00 : f32
    %215 = vector.broadcast %cst_215 : f32 to vector<40x32xf32>
    %c0_216 = arith.constant 0 : index
    %c0_217 = arith.constant 0 : index
    %216 = vector.load %arg12[%c0_216, %c0_217] : memref<40x32xf32, #tpu.memory_space<vmem>>, vector<40x32xf32>
    tpu.vector_store %arg12[%c0_216, %c0_217], %215 {strides = array<i32>} : memref<40x32xf32, #tpu.memory_space<vmem>>, vector<40x32xf32>,
    %c0_218 = arith.constant 0 : index
    %c0_219 = arith.constant 0 : index
    %217 = vector.load %arg12[%c0_218, %c0_219] : memref<40x32xf32, #tpu.memory_space<vmem>>, vector<32x32xf32>
    tpu.vector_store %arg12[%c0_218, %c0_219], %214 {strides = array<i32>} : memref<40x32xf32, #tpu.memory_space<vmem>>, vector<32x32xf32>,
    %c1_220 = arith.constant 1 : index
    %c0_221 = arith.constant 0 : index
    %218 = vector.load %arg12[%c1_220, %c0_221] : memref<40x32xf32, #tpu.memory_space<vmem>>, vector<32x32xf32>
    %219 = arith.maximumf %214, %218 : vector<32x32xf32>
    %c2_222 = arith.constant 2 : index
    %c0_223 = arith.constant 0 : index
    %220 = vector.load %arg12[%c2_222, %c0_223] : memref<40x32xf32, #tpu.memory_space<vmem>>, vector<32x32xf32>
    %221 = arith.maximumf %219, %220 : vector<32x32xf32>
    %c3_224 = arith.constant 3 : index
    %c0_225 = arith.constant 0 : index
    %222 = vector.load %arg12[%c3_224, %c0_225] : memref<40x32xf32, #tpu.memory_space<vmem>>, vector<32x32xf32>
    %223 = arith.maximumf %221, %222 : vector<32x32xf32>
    %224 = tpu.iota {dimensions = array<i32: 0>} : vector<32x1xi32>
    %c4_i32 = arith.constant 4 : i32
    %c0_i32 = arith.constant 0 : i32
    %225 = arith.cmpi eq, %c4_i32, %c0_i32 : i32
    %c1_i32 = arith.constant 1 : i32
    %226 = arith.select %225, %c1_i32, %c4_i32 : i32
    %227 = vector.broadcast %226 : i32 to vector<32x1xi32>
    %228 = arith.remsi %224, %227 : vector<32x1xi32>
    %c0_i32_226 = arith.constant 0 : i32
    %229 = vector.broadcast %c0_i32_226 : i32 to vector<32x1xi32>
    %230 = arith.cmpi ne, %228, %229 : vector<32x1xi32>
    %c0_i32_227 = arith.constant 0 : i32
    %231 = vector.broadcast %c0_i32_227 : i32 to vector<32x1xi32>
    %232 = arith.cmpi slt, %228, %231 : vector<32x1xi32>
    %c0_i32_228 = arith.constant 0 : i32
    %233 = arith.cmpi slt, %226, %c0_i32_228 : i32
    %234 = vector.broadcast %233 : i1 to vector<32x1xi1>
    %235 = vector.broadcast %234 : vector<32x1xi1> to vector<32x1xi1>
    %236 = arith.xori %232, %235 : vector<32x1xi1>
    %237 = arith.andi %236, %230 : vector<32x1xi1>
    %238 = vector.broadcast %226 : i32 to vector<32x1xi32>
    %239 = arith.addi %228, %238 : vector<32x1xi32>
    %240 = arith.select %237, %239, %228 : vector<32x1xi1>, vector<32x1xi32>
    %c0_i32_229 = arith.constant 0 : i32
    %241 = vector.broadcast %c0_i32_229 : i32 to vector<32x1xi32>
    %242 = arith.cmpi eq, %240, %241 : vector<32x1xi32>
    %c32_i32 = arith.constant 32 : i32
    %243 = vector.broadcast %c32_i32 : i32 to vector<32x1xi32>
    %244 = arith.cmpi slt, %224, %243 : vector<32x1xi32>
    %245 = arith.andi %242, %244 : vector<32x1xi1>
    %cst_230 = arith.constant 0.000000e+00 : f32
    %246 = vector.shape_cast %245 : vector<32x1xi1> to vector<32x1xi1>
    %247 = vector.broadcast %246 : vector<32x1xi1> to vector<32x32xi1>
    %248 = vector.broadcast %cst_230 : f32 to vector<32x32xf32>
    %249 = arith.select %247, %223, %248 : vector<32x32xi1>, vector<32x32xf32>
    %cst_231 = arith.constant dense<0.000000e+00> : vector<32xf32>
    %250 = vector.multi_reduction <add>, %249, %cst_231 [0] : vector<32x32xf32> to vector<32xf32>
    %251 = vector.shape_cast %250 : vector<32xf32> to vector<1x32xf32>
    %cst_232 = arith.constant 1.250000e-01 : f32
    %252 = vector.broadcast %cst_232 : f32 to vector<1x32xf32>
    %253 = arith.mulf %251, %252 : vector<1x32xf32>
    %c0_233 = arith.constant 0 : index
    %c0_234 = arith.constant 0 : index
    %254 = vector.load %arg8[%c0_233, %c0_234] : memref<32x10xf32, #tpu.memory_space<vmem>>, vector<32x10xf32>
    %cst_235 = arith.constant dense<0.000000e+00> : vector<1x10xf32>
    %255 = tpu.matmul %253, %254, %cst_235 {dimension_numbers = #tpu.dot_dimension_numbers<[1], [0], [0], [1], [0, 0, 1, 1], [], []>} : vector<1x32xf32>, vector<32x10xf32>, vector<1x10xf32> -> vector<1x10xf32>
    %c0_236 = arith.constant 0 : index
    %c0_237 = arith.constant 0 : index
    %256 = vector.load %arg9[%c0_236, %c0_237] : memref<1x10xf32, #tpu.memory_space<vmem>>, vector<1x10xf32>
    %257 = arith.addf %255, %256 : vector<1x10xf32>
    %c0_238 = arith.constant 0 : index
    %c0_239 = arith.constant 0 : index
    %c0_240 = arith.constant 0 : index
    %258 = vector.load %arg10[%c0_238, %c0_239, %c0_240] : memref<1x1x10xf32, #tpu.memory_space<vmem>>, vector<1x1x10xf32>
    %259 = vector.shape_cast %258 : vector<1x1x10xf32> to vector<1x10xf32>
    %260 = vector.shape_cast %257 : vector<1x10xf32> to vector<1x1x10xf32>
    tpu.vector_store %arg10[%c0_238, %c0_239, %c0_240], %260 {strides = array<i32>} : memref<1x1x10xf32, #tpu.memory_space<vmem>>, vector<1x1x10xf32>,
    return
  }
  func.func @transform_0(%arg0: i32) -> (i32, i32, i32) {
    %c0_i32 = arith.constant 0 : i32
    %c0_i32_0 = arith.constant 0 : i32
    %c0_i32_1 = arith.constant 0 : i32
    return %arg0, %c0_i32, %c0_i32_0 : i32, i32, i32
  }
  func.func @transform_1(%arg0: i32) -> (i32, i32, i32, i32) {
    %c0_i32 = arith.constant 0 : i32
    %c0_i32_0 = arith.constant 0 : i32
    %c0_i32_1 = arith.constant 0 : i32
    %c0_i32_2 = arith.constant 0 : i32
    %c0_i32_3 = arith.constant 0 : i32
    return %c0_i32, %c0_i32_0, %c0_i32_1, %c0_i32_2 : i32, i32, i32, i32
  }
  func.func @transform_2(%arg0: i32) -> (i32, i32) {
    %c0_i32 = arith.constant 0 : i32
    %c0_i32_0 = arith.constant 0 : i32
    %c0_i32_1 = arith.constant 0 : i32
    return %c0_i32, %c0_i32_0 : i32, i32
  }
  func.func @transform_3(%arg0: i32) -> (i32, i32) {
    %c0_i32 = arith.constant 0 : i32
    %c0_i32_0 = arith.constant 0 : i32
    %c0_i32_1 = arith.constant 0 : i32
    return %c0_i32, %c0_i32_0 : i32, i32
  }
  func.func @transform_4(%arg0: i32) -> (i32, i32, i32) {
    %c0_i32 = arith.constant 0 : i32
    %c0_i32_0 = arith.constant 0 : i32
    %c0_i32_1 = arith.constant 0 : i32
    %c0_i32_2 = arith.constant 0 : i32
    return %c0_i32, %c0_i32_0, %c0_i32_1 : i32, i32, i32
  }
  func.func @transform_5(%arg0: i32) -> (i32, i32) {
    %c0_i32 = arith.constant 0 : i32
    %c0_i32_0 = arith.constant 0 : i32
    %c0_i32_1 = arith.constant 0 : i32
    return %c0_i32, %c0_i32_0 : i32, i32
  }
  func.func @transform_6(%arg0: i32) -> (i32, i32) {
    %c0_i32 = arith.constant 0 : i32
    %c0_i32_0 = arith.constant 0 : i32
    %c0_i32_1 = arith.constant 0 : i32
    return %c0_i32, %c0_i32_0 : i32, i32
  }
  func.func @transform_7(%arg0: i32) -> (i32, i32) {
    %c0_i32 = arith.constant 0 : i32
    %c0_i32_0 = arith.constant 0 : i32
    %c0_i32_1 = arith.constant 0 : i32
    return %c0_i32, %c0_i32_0 : i32, i32
  }
  func.func @transform_8(%arg0: i32) -> (i32, i32) {
    %c0_i32 = arith.constant 0 : i32
    %c0_i32_0 = arith.constant 0 : i32
    %c0_i32_1 = arith.constant 0 : i32
    return %c0_i32, %c0_i32_0 : i32, i32
  }
  func.func @transform_9(%arg0: i32) -> (i32, i32, i32) {
    %c0_i32 = arith.constant 0 : i32
    %c0_i32_0 = arith.constant 0 : i32
    %c0_i32_1 = arith.constant 0 : i32
    return %arg0, %c0_i32, %c0_i32_0 : i32, i32, i32
  }
}

</mosaic_0001>

<bundles_post_ra>
// kernel: tpu_custom_call.1
= control target key start
LH: loop header
LB: loop body
LE: loop exit
PB: predicated region body
PF: predicated region fallthrough
CT: control target
= control target key end

     0   :  { %14 = vsyncpa [#allocation5], 0  ;;  %s3574_s0 = inlined_call_operand.vmem [shape: f32[2,37,16], index: 0, kind: input, shape index: {}]   ;;  %s3575_s1 = inlined_call_operand.hbm [shape: bf16[4,6,16,32], index: 1, kind: input, shape index: {}]   ;;  %s3576_s2 = inlined_call_operand.vmem [shape: f32[1,32], index: 2, kind: input, shape index: {}]   ;;  %s3577_s3 = inlined_call_operand.vmem [shape: f32[1,32], index: 3, kind: input, shape index: {}]   ;;  %s3578_s4 = inlined_call_operand.vmem [shape: bf16[3,32,32], index: 4, kind: input, shape index: {}]   ;;  %s3579_s5 = inlined_call_operand.vmem [shape: f32[1,32], index: 5, kind: input, shape index: {}]   ;;  %s3580_s6 = inlined_call_operand.vmem [shape: f32[1,32], index: 6, kind: input, shape index: {}]   ;;  %s3581_s7 = inlined_call_operand.vmem [shape: f32[32,10], index: 7, kind: input, shape index: {}]   ;;  %s3582_s8 = inlined_call_operand.vmem [shape: f32[1,10], index: 8, kind: input, shape index: {}]   ;;  %s3583_s9 = inlined_call_operand.hbm [shape: f32[2,1,10], index: 9, kind: output, shape index: {}]  }
   0x1   :  { %15 = vsyncpa [#allocation6], 0 }
   0x2   :  { %17 = vsyncpa [#allocation6 + $0x1], 0  ;;  %s3202_s30 = smov 0   ;;  %s3204_s10 = smov 0  }
   0x3   :  { %s3206_s11 = smov 0   ;;  %s3208_s12 = smov 0  }
   0x4 LB: > { %s3223_s13 = sadd.s32 4294967295, %s3143_s12   ;;  %s2494_s14 = sadd.s32 4294967294, %s3143_s12   ;;  %s3143_s12 = sphi %s3208_s12, %s3599_s12   ;;  %s3139_s11 = sphi %s3206_s11, %s3598_s11   ;;  %s3135_s10 = sphi %s3204_s10, %s3597_s10   ;;  %s3131_s30 = sphi %s3202_s30, %s3596_s30  }
   0x5   : > { %s3227_s15 = sadd.s32 1, %s3143_s12   ;;  %s224_s16 = sadd.s32 1, %s3139_s11 }
   0x6   : > { %s221_s17 = ssub.s32 %s3143_s12, %s3227_s15  ;;  %p234_p0 = scmp.ne.s32.totalorder %s3139_s11, %s3135_s10 }
   0x7   : > { %p222_p1 = scmp.eq.s32.totalorder %s221_s17, 0  ;;  %p235_p2 = scmp.eq.s32.totalorder %s3223_s13, 1 }
   0x8   : > { %p240_p3 = scmp.ne.s32.totalorder %s3135_s10, %s3131_s30  ;;  %p241_p4 = scmp.eq.s32.totalorder %s2494_s14, 1 }
   0x9   : > { %s3238_s18 = scalar_select %p222_p1, %s3139_s11, %s224_s16  }
   0xa   : > { %p3240_p5 = por %p235_p2, %p234_p0  ;;  %p3244_p6 = por %p241_p4, %p240_p3 }
   0xb   : > { %p2495_p7 = scmp.ge.s32.totalorder %s3143_s12, 1  ;;  %p248_p8 = scmp.lt.s32.totalorder %s3143_s12, 3 }
   0xc   : > { %s3587_s19 = scalar_select %p3240_p5, 1, 0 }
   0xd   : > { %s3588_s20 = scalar_select %p3244_p6, 1, 0 }
   0xe   : > { %p3584_p9 = scmp.eq.s32.totalorder %s3223_s13, 0  ;;  %p3251_p10 = pnand %p2495_p7, %p248_p8 }
   0xf   : > { %s3145_s22 = smov [#allocation4]   ;;  %s3049_s27 = scalar_lea.hbm %s3575_s1, 3072 }
  0x10   : > { %s3589_s21 = scalar_select %p3251_p10, 1, 0 }
  0x11   : > { %s260_s23 = sshll.u32 %s3145_s22, 4  ;;  %p2970_p11 = pneg %p3251_p10  ;;  %s261_s23 = int_to_ptr.vmem [resolvable:$true] %s260_s23 }
  0x12   : > { %p3050_p13 = scmp.ne.s32.totalorder %s3575_s1, %s3049_s27  ;;  %p3056_p3 = scmp.lt.u32.totalorder %s3049_s27, %s3575_s1 }
  0x13   : > { %p3259_p12 = pnand %p3584_p9, %p2970_p11 }
  0x15   : > { %p3051_p0 = pneg %p3259_p12 }
  0x17   : > { %p3052_p1 = pnand %p3051_p0, %p3050_p13 }
  0x19   : > { %p3053_p2 = pneg %p3052_p1 }
  0x1b   : > { %p3058_p4 = pnand %p3056_p3, %p3053_p2 }
  0x1d   : > { %3061 = shalt.err (!%p3058_p4)
}
  0x1e   : > { %s3062_s17 = scalar_lea.vmem %s261_s23, 3072  ;;  %p3070_p9 = scmp.lt.s32.totalorder %s261_s23, %s261_s23 }
  0x1f   : > { %p3063_p7 = scmp.ne.s32.totalorder %s261_s23, %s3062_s17  ;;  %p3071_p6 = scmp.lt.s32.totalorder %s3062_s17, %s3062_s17 }
  0x21   : > { %p3065_p8 = pnand %p3063_p7, %p3051_p0  ;;  %p3072_p5 = por %p3071_p6, %p3070_p9 }
  0x23   : > { %p3066_p11 = pneg %p3065_p8 }
  0x25   : > { %p3073_p10 = pnand %p3072_p5, %p3066_p11 }
  0x27   : > { %3076 = shalt.err (!%p3073_p10)
}
  0x28   : > { %s3146_s22 = smov 64   ;;  %s3147_s25 = smov 4  }
  0x29   : > { %2973 = dma.hbm_to_vmem [thread:$0]  (!%p3259_p12), %s3575_s1, 3072, %s261_s23, [#allocation5], %s3146_s22, %s3146_s22, %s3147_s25  }
  0x2a   : > { %p3591_p13 = scmp.ne.s32.totalorder %s3589_s21, 0 }
  0x2b   : > { %p3592_p1 = scmp.eq.s32.totalorder (!%p3591_p13), %s3223_s13, 0 }
  0x2c   : > { %305 = sbr.rel (%p3591_p13) target bundleno = 943 (0x3af), region = 56 }
  0x33   : > { %3122 = dma.done.wait (%p3592_p1), [#allocation5], 3072   ;;  %p3593_p0 = pmov %p3592_p1 }
  0x34   : > { %p340_p5 = scmp.lt.s32.totalorder %s3223_s13, 1  ;;  %v3019_v0 = vld [vmem:[#allocation4 + $0x8] sm:$0xff]   ;;  %v3020_v1 = vld [vmem:[#allocation4] sm:$0xff]   ;;  %vm371_vm0 = vcmask 130048   ;;  %v3021_v14 = vld [vmem:[#allocation4 + $0x38] sm:$0xff]   ;;  %vm1936_vm1 = vcmask 261120  }
  0x35   : > { %3124 = vsyncadd (%p3593_p0), [#allocation5], 4294964224  ;;  %2690 = vmatprep.subr.bf16.mxu1 %v3019_v0  ;;  %2696 = vmatprep.subr.bf16.mxu0 %v3020_v1  ;;  %v3022_v15 = vld [vmem:[#allocation4 + $0x10] sm:$0xff]   ;;  %v3024_v20 = vld [vmem:[#allocation4 + $0x18] sm:$0xff]   ;;  %vm3150_vm2 = vmmov 0   ;;  %s338_s25 = sand.u32 1, %s3135_s10  }
  0x36   : > { %s341_s27 = scalar_select %p340_p5, %s3223_s13, 1  ;;  %2691 = vmatpush3.bf16.msra.mxu1 %v3019_v0  ;;  %2697 = vmatpush3.bf16.msra.mxu0 %v3020_v1  ;;  %v3023_v16 = vld [vmem:[#allocation4 + $0x30] sm:$0xff]   ;;  %v3025_v23 = vld [vmem:[#allocation4 + $0x40] sm:$0xff]   ;;  %v3027_v31 = vld [vmem:[#allocation4 + $0x48] sm:$0xff]   ;;  %v3148_v0 = vmov 0.0   ;;  %vm2412_vm7 = vcmask 73728  }
  0x37   : > { %2726 = vmatprep.subr.bf16.mxu1 %v3021_v14  ;;  %2702 = vmatprep.subr.bf16.mxu0 %v3022_v15  ;;  %v3026_v28 = vld [vmem:[#allocation4 + $0x20] sm:$0xff]   ;;  %v3028_v36 = vld [vmem:[#allocation4 + $0x28] sm:$0xff]   ;;  %v3029_v39 = vld [vmem:[#allocation4 + $0x50] sm:$0xff]   ;;  %1940 = vst.msk [vmem:[#allocation2 + $0x18] sm:$0xff] %vm1936_vm1, %v3148_v0  ;;  %s2415_s23 = scalar_lea.sflag [#allocation6], %s338_s25  ;;  %p3594_p9 = scmp.ne.s32.totalorder %s3587_s19, 0 }
  0x38   : > { %s2963_s29 = smul.u32 40, %s341_s27  ;;  %v3030_v44 = vld [vmem:[#allocation4 + $0x68] sm:$0xff]   ;;  %v3031_v47 = vld [vmem:[#allocation4 + $0x58] sm:$0xff]   ;;  %v3032_v49 = vld [vmem:[#allocation4 + $0x60] sm:$0xff]   ;;  %1937 = vst.msk [vmem:[#allocation2] sm:$0xff] %vm1936_vm1, %v3148_v0  ;;  %s2598_s27 = sshll.u32 %s3223_s13, 4 }
  0x39   : > { %v3033_v50 = vld [vmem:[#allocation4 + $0x98] sm:$0xff]   ;;  %v3034_v51 = vld [vmem:[#allocation4 + $0x70] sm:$0xff]   ;;  %v3037_v54 = vld [vmem:[#allocation4 + $0xa0] sm:$0xff]   ;;  %1938 = vst.msk [vmem:[#allocation2 + $0x8] sm:$0xff] %vm1936_vm1, %v3148_v0  ;;  %s3532_s21 = scalar_lea.hbm %s3583_s9, %s2598_s27  ;;  %s3151_s13 = smov [#allocation7]  }
  0x3a   : > { %s3290_s16 = scalar_lea.vmem %s3574_s0, %s2963_s29  ;;  %v3035_v52 = vld [vmem:[#allocation4 + $0x90] sm:$0xff]   ;;  %v3036_v53 = vld [vmem:[#allocation4 + $0x78] sm:$0xff]   ;;  %v3038_v55 = vld [vmem:[#allocation4 + $0x80] sm:$0xff]   ;;  %1939 = vst.msk [vmem:[#allocation2 + $0x10] sm:$0xff] %vm1936_vm1, %v3148_v0  ;;  %s339_s29 = scalar_lea.vmem [#allocation7], %s338_s25 }
  0x3b   : > { %v356_v2 = vld [vmem:[%s3290_s16 + $0x1] sm:$0xff]  ;;  %v357_v3 = vld [vmem:[%s3290_s16 + $0x9] sm:$0xff]  ;;  %v358_v7 = vld [vmem:[%s3290_s16 + $0x11] sm:$0xff]  ;;  %1941 = vst.msk [vmem:[#allocation2 + $0x20] sm:$0xff] %vm1936_vm1, %v3148_v0  ;;  %s2427_s14 = sshll.u32 %s339_s29, 4  ;;  %s3081_s22 = sshll.u32 %s3151_s13, 4  ;;  %s3534_s14 = int_to_ptr.vmem [resolvable:$true] %s2427_s14  ;;  %s3082_s22 = int_to_ptr.vmem [resolvable:$false] %s3081_s22 }
  0x3c   : > { %v348_v4 = vld [vmem:[%s3290_s16] sm:$0xff]  ;;  %v3295_v5 = vpack.c.bf16 %v357_v3, %v356_v2  ;;  %v349_v6 = vld [vmem:[%s3290_s16 + $0x8] sm:$0xff]  ;;  %v350_v11 = vld [vmem:[%s3290_s16 + $0x10] sm:$0xff]  ;;  %1942 = vst.msk [vmem:[#allocation2 + $0x28] sm:$0xff] %vm1936_vm1, %v3148_v0  ;;  %s3077_s17 = scalar_lea.vmem %s3534_s14, 16  ;;  %s3083_s26 = scalar_lea.vmem %s3082_s22, 32 }
  0x3d   : > { %v359_v8 = vld [vmem:[%s3290_s16 + $0x19] sm:$0xff]  ;;  %v3300_v9 = vpack.c.bf16 %v349_v6, %v348_v4  ;;  %v488_v17 = vld [vmem:[%s3290_s16 + $0x2] sm:$0xff]  ;;  %v489_v18 = vld [vmem:[%s3290_s16 + $0xa] sm:$0xff]  ;;  %2210 = vst.msk [vmem:[#allocation3] sm:$0xff] %vm1936_vm1, %v3148_v0  ;;  %p3078_p6 = scmp.ne.s32.totalorder %s3534_s14, %s3077_s17  ;;  %p3084_p2 = scmp.lt.s32.totalorder %s3534_s14, %s3082_s22 }
  0x3e   : > { %v3302_v10 = vpack.c.bf16 %v359_v8, %v358_v7  ;;  %v351_v12 = vld [vmem:[%s3290_s16 + $0x18] sm:$0xff]  ;;  %2692 = vmatprep.mubr.msk.bf16.mxu1 %vm371_vm0, %v3295_v5  ;;  %v3320_v19 = vpack.c.bf16 %v489_v18, %v488_v17  ;;  %v562_v24 = vld [vmem:[%s3290_s16 + $0x3] sm:$0xff]  ;;  %v563_v25 = vld [vmem:[%s3290_s16 + $0xb] sm:$0xff]  ;;  %2211 = vst.msk [vmem:[#allocation3 + $0x8] sm:$0xff] %vm1936_vm1, %v3148_v0  ;;  %p3085_p3 = scmp.lt.s32.totalorder %s3083_s26, %s3077_s17 }
  0x3f   : > { %v3308_v13 = vpack.c.bf16 %v351_v12, %v350_v11  ;;  %2698 = vmatprep.mubr.msk.bf16.mxu0 %vm371_vm0, %v3300_v9  ;;  %v490_v21 = vld [vmem:[%s3290_s16 + $0x12] sm:$0xff]  ;;  %v491_v22 = vld [vmem:[%s3290_s16 + $0x1a] sm:$0xff]  ;;  %v3334_v27 = vpack.c.bf16 %v563_v25, %v562_v24  ;;  %v636_v32 = vld [vmem:[%s3290_s16 + $0x4] sm:$0xff]  ;;  %2212 = vst.msk [vmem:[#allocation3 + $0x10] sm:$0xff] %vm1936_vm1, %v3148_v0  ;;  %p3079_p10 = pnand %p3078_p6, %p3594_p9 }
  0x40   : > { %2693 = vmatmul.mubr.msk.bf16.vlgmr.msra.gmra.mrb[0].mxu1 %vm371_vm0, %v3302_v10  ;;  %v3330_v26 = vpack.c.bf16 %v491_v22, %v490_v21  ;;  %v564_v29 = vld [vmem:[%s3290_s16 + $0x13] sm:$0xff]  ;;  %v565_v30 = vld [vmem:[%s3290_s16 + $0x1b] sm:$0xff]  ;;  %v710_v40 = vld [vmem:[%s3290_s16 + $0x5] sm:$0xff]  ;;  %2213 = vst.msk [vmem:[#allocation3 + $0x18] sm:$0xff] %vm1936_vm1, %v3148_v0  ;;  %p3086_p4 = por %p3085_p3, %p3084_p2 }
  0x41   : > { %2699 = vmatmul.mubr.msk.bf16.vlgmr.msra.gmra.mrb[0].mxu0 %vm371_vm0, %v3308_v13  ;;  %2727 = vmatpush3.bf16.msra.mxu1 %v3021_v14  ;;  %v637_v33 = vld [vmem:[%s3290_s16 + $0xc] sm:$0xff]  ;;  %v3346_v34 = vpack.c.bf16 %v565_v30, %v564_v29  ;;  %v638_v37 = vld [vmem:[%s3290_s16 + $0x14] sm:$0xff]  ;;  %v639_v38 = vld [vmem:[%s3290_s16 + $0x1c] sm:$0xff]  ;;  %2214 = vst.msk [vmem:[#allocation3 + $0x20] sm:$0xff] %vm1936_vm1, %v3148_v0  ;;  %p3080_p12 = pneg %p3079_p10 }
  0x42   : > { %2728 = vmatprep.mubr.msk.bf16.mxu1 %vm371_vm0, %v3295_v5  ;;  %2732 = vmatprep.subr.bf16.mxu1 %v3023_v16  ;;  %v3350_v35 = vpack.c.bf16 %v637_v33, %v636_v32  ;;  %v711_v41 = vld [vmem:[%s3290_s16 + $0xd] sm:$0xff]  ;;  %v3362_v42 = vpack.c.bf16 %v639_v38, %v638_v37  ;;  %v712_v45 = vld [vmem:[%s3290_s16 + $0x15] sm:$0xff]  ;;  %v713_v46 = vld [vmem:[%s3290_s16 + $0x1d] sm:$0xff] }
  0x43   : > { %2703 = vmatpush3.bf16.msra.mxu0 %v3022_v15  ;;  %2704 = vmatprep.mubr.msk.bf16.mxu0 %vm371_vm0, %v3320_v19  ;;  %v3366_v43 = vpack.c.bf16 %v711_v41, %v710_v40  ;;  %v3376_v48 = vpack.c.bf16 %v713_v46, %v712_v45  ;;  %v3039_v56 = vld [vmem:[#allocation4 + $0xa8] sm:$0xff]   ;;  %v3041_v58 = vld [vmem:[#allocation4 + $0xb0] sm:$0xff]   ;;  %v3042_v59 = vld [vmem:[#allocation4 + $0xb8] sm:$0xff]   ;;  %p3087_p7 = pnand %p3086_p4, %p3080_p12 }
  0x44   : > { %2708 = vmatprep.subr.bf16.mxu0 %v3024_v20  ;;  %v3040_v57 = vld [vmem:[#allocation4 + $0x88] sm:$0xff]   ;;  %v3043_v1 = vld [vmem:[%s3578_s4 + $0x10] sm:$0xff]   ;;  %v3044_v2 = vld [vmem:[%s3578_s4 + $0x18] sm:$0xff]  }
  0x45   : > { %v3467_v3 = vld [vmem:[%s3578_s4] sm:$0xff]  }
  0x46   : > { %v2519_v12 = vld [vmem:[%s3576_s2] ss:$0 sm:$0xff] }
  0x47   : > { %v2520_v14 = vld [vmem:[%s3577_s3] ss:$0 sm:$0xff] }
  0x48   : > { %2729 = vmatmul.mubr.msk.bf16.vlgmr.msra.gmra.mrb[4].mxu1 %vm371_vm0, %v3302_v10 }
  0x49   : > { %2733 = vmatpush3.bf16.msra.mxu1 %v3023_v16  ;;  %2734 = vmatprep.mubr.msk.bf16.mxu1 %vm371_vm0, %v3300_v9 }
  0x4a   : > { %2738 = vmatprep.subr.bf16.mxu1 %v3025_v23 }
  0x4d   : > { %2705 = vmatmul.mubr.msk.bf16.vlgmr.msra.gmra.mrb[0].mxu0 %vm371_vm0, %v3330_v26 }
  0x4e   : > { %2709 = vmatpush3.bf16.msra.mxu0 %v3024_v20  ;;  %2710 = vmatprep.mubr.msk.bf16.mxu0 %vm371_vm0, %v3334_v27 }
  0x4f   : > { %2714 = vmatprep.subr.bf16.mxu0 %v3026_v28 }
  0x54   : > { %2735 = vmatmul.mubr.msk.bf16.vlgmr.msra.gmra.mrb[4].mxu1 %vm371_vm0, %v3308_v13 }
  0x55   : > { %2739 = vmatpush3.bf16.msra.mxu1 %v3025_v23  ;;  %2740 = vmatprep.mubr.msk.bf16.mxu1 %vm371_vm0, %v3320_v19 }
  0x56   : > { %2744 = vmatprep.subr.bf16.mxu1 %v3027_v31 }
  0x59   : > { %2711 = vmatmul.mubr.msk.bf16.vlgmr.msra.gmra.mrb[0].mxu0 %vm371_vm0, %v3346_v34 }
  0x5a   : > { %2715 = vmatpush3.bf16.msra.mxu0 %v3026_v28  ;;  %2716 = vmatprep.mubr.msk.bf16.mxu0 %vm371_vm0, %v3350_v35 }
  0x5b   : > { %2720 = vmatprep.subr.bf16.mxu0 %v3028_v36 }
  0x60   : > { %2741 = vmatmul.mubr.msk.bf16.vlgmr.msra.gmra.mrb[4].mxu1 %vm371_vm0, %v3330_v26 }
  0x61   : > { %2745 = vmatpush3.bf16.msra.mxu1 %v3027_v31  ;;  %2746 = vmatprep.mubr.msk.bf16.mxu1 %vm371_vm0, %v3334_v27 }
  0x62   : > { %2750 = vmatprep.subr.bf16.mxu1 %v3029_v39 }
  0x65   : > { %2717 = vmatmul.mubr.msk.bf16.vlgmr.msra.gmra.mrb[0].mxu0 %vm371_vm0, %v3362_v42 }
  0x66   : > { %2721 = vmatpush3.bf16.msra.mxu0 %v3028_v36  ;;  %2722 = vmatprep.mubr.msk.bf16.mxu0 %vm371_vm0, %v3366_v43 }
  0x67   : > { %2762 = vmatprep.subr.bf16.mxu0 %v3030_v44 }
  0x6c   : > { %2747 = vmatmul.mubr.msk.bf16.vlgmr.msra.gmra.mrb[4].mxu1 %vm371_vm0, %v3346_v34 }
  0x6d   : > { %2751 = vmatpush3.bf16.msra.mxu1 %v3029_v39  ;;  %2752 = vmatprep.mubr.msk.bf16.mxu1 %vm371_vm0, %v3350_v35 }
  0x6e   : > { %2756 = vmatprep.subr.bf16.mxu1 %v3031_v47 }
  0x71   : > { %2723 = vmatmul.mubr.msk.bf16.vlgmr.msra.gmra.mrb[0].mxu0 %vm371_vm0, %v3376_v48 }
  0x72   : > { %2763 = vmatpush3.bf16.msra.mxu0 %v3030_v44  ;;  %2764 = vmatprep.mubr.msk.bf16.mxu0 %vm371_vm0, %v3295_v5 }
  0x73   : > { %2768 = vmatprep.subr.bf16.mxu0 %v3032_v49 }
  0x78   : > { %2753 = vmatmul.mubr.msk.bf16.vlgmr.msra.gmra.mrb[4].mxu1 %vm371_vm0, %v3362_v42 }
  0x79   : > { %2765 = vmatmul.mubr.msk.bf16.vlgmr.msra.gmra.mrb[4].mxu0 %vm371_vm0, %v3302_v10  ;;  %2757 = vmatpush3.bf16.msra.mxu1 %v3031_v47 }
  0x7a   : > { %2769 = vmatpush3.bf16.msra.mxu0 %v3032_v49  ;;  %2758 = vmatprep.mubr.msk.bf16.mxu1 %vm371_vm0, %v3366_v43 }
  0x7b   : > { %2770 = vmatprep.mubr.msk.bf16.mxu0 %vm371_vm0, %v3300_v9  ;;  %2798 = vmatprep.subr.bf16.mxu1 %v3033_v50 }
  0x7c   : > { %2774 = vmatprep.subr.bf16.mxu0 %v3034_v51 }
  0x84   : > { %2759 = vmatmul.mubr.msk.bf16.vlgmr.msra.gmra.mrb[4].mxu1 %vm371_vm0, %v3376_v48 }
  0x85   : > { %2771 = vmatmul.mubr.msk.bf16.vlgmr.msra.gmra.mrb[4].mxu0 %vm371_vm0, %v3308_v13  ;;  %2799 = vmatpush3.bf16.msra.mxu1 %v3033_v50 }
  0x86   : > { %2800 = vmatprep.mubr.msk.bf16.mxu1 %vm371_vm0, %v3295_v5  ;;  %2804 = vmatprep.subr.bf16.mxu1 %v3035_v52 }
  0x87   : > { %2775 = vmatpush3.bf16.msra.mxu0 %v3034_v51  ;;  %2776 = vmatprep.mubr.msk.bf16.mxu0 %vm371_vm0, %v3320_v19 }
  0x88   : > { %2780 = vmatprep.subr.bf16.mxu0 %v3036_v53 }
  0x8c   : > { %2801 = vmatmul.mubr.msk.bf16.vlgmr.msra.gmra.mrb[8].mxu1 %vm371_vm0, %v3302_v10 }
  0x8d   : > { %2805 = vmatpush3.bf16.msra.mxu1 %v3035_v52  ;;  %2806 = vmatprep.mubr.msk.bf16.mxu1 %vm371_vm0, %v3300_v9 }
  0x8e   : > { %2810 = vmatprep.subr.bf16.mxu1 %v3037_v54 }
  0x91   : > { %2777 = vmatmul.mubr.msk.bf16.vlgmr.msra.gmra.mrb[4].mxu0 %vm371_vm0, %v3330_v26 }
  0x92   : > { %2781 = vmatpush3.bf16.msra.mxu0 %v3036_v53  ;;  %2782 = vmatprep.mubr.msk.bf16.mxu0 %vm371_vm0, %v3334_v27 }
  0x93   : > { %2786 = vmatprep.subr.bf16.mxu0 %v3038_v55 }
  0x98   : > { %2807 = vmatmul.mubr.msk.bf16.vlgmr.msra.gmra.mrb[8].mxu1 %vm371_vm0, %v3308_v13 }
  0x99   : > { %2811 = vmatpush3.bf16.msra.mxu1 %v3037_v54  ;;  %2812 = vmatprep.mubr.msk.bf16.mxu1 %vm371_vm0, %v3320_v19 }
  0x9a   : > { %2816 = vmatprep.subr.bf16.mxu1 %v3039_v56 }
  0x9d   : > { %2783 = vmatmul.mubr.msk.bf16.vlgmr.msra.gmra.mrb[4].mxu0 %vm371_vm0, %v3346_v34 }
  0x9e   : > { %2787 = vmatpush3.bf16.msra.mxu0 %v3038_v55  ;;  %2788 = vmatprep.mubr.msk.bf16.mxu0 %vm371_vm0, %v3350_v35 }
  0x9f   : > { %2792 = vmatprep.subr.bf16.mxu0 %v3040_v57 }
  0xa4   : > { %2813 = vmatmul.mubr.msk.bf16.vlgmr.msra.gmra.mrb[8].mxu1 %vm371_vm0, %v3330_v26 }
  0xa5   : > { %2817 = vmatpush3.bf16.msra.mxu1 %v3039_v56  ;;  %2818 = vmatprep.mubr.msk.bf16.mxu1 %vm371_vm0, %v3334_v27 }
  0xa6   : > { %2822 = vmatprep.subr.bf16.mxu1 %v3041_v58 }
  0xa9   : > { %2789 = vmatmul.mubr.msk.bf16.vlgmr.msra.gmra.mrb[4].mxu0 %vm371_vm0, %v3362_v42 }
  0xaa   : > { %2793 = vmatpush3.bf16.msra.mxu0 %v3040_v57  ;;  %2794 = vmatprep.mubr.msk.bf16.mxu0 %vm371_vm0, %v3366_v43 }
  0xab   : > { %2834 = vmatprep.subr.bf16.mxu0 %v3043_v1 }
  0xb0   : > { %2819 = vmatmul.mubr.msk.bf16.vlgmr.msra.gmra.mrb[8].mxu1 %vm371_vm0, %v3346_v34 }
  0xb1   : > { %2823 = vmatpush3.bf16.msra.mxu1 %v3041_v58  ;;  %2824 = vmatprep.mubr.msk.bf16.mxu1 %vm371_vm0, %v3350_v35 }
  0xb2   : > { %2828 = vmatprep.subr.bf16.mxu1 %v3042_v59 }
  0xb5   : > { %2795 = vmatmul.mubr.msk.bf16.vlgmr.msra.gmra.mrb[4].mxu0 %vm371_vm0, %v3376_v48 }
  0xb6   : > { %2835 = vmatpush3.bf16.msra.mxu0 %v3043_v1 }
  0xb7   : > { %2836 = vmatprep.subr.bf16.mxu0 %v3044_v2 }
  0xba   : > { %2837 = vmatpush3.bf16.msra.mxu0 %v3044_v2 }
  0xbb   : > { %2842 = vmatprep.subr.bf16.mxu0 %v3467_v3 }
  0xbc   : > { %2825 = vmatmul.mubr.msk.bf16.vlgmr.msra.gmra.mrb[8].mxu1 %vm371_vm0, %v3362_v42 }
  0xbd   : > { %2829 = vmatpush3.bf16.msra.mxu1 %v3042_v59  ;;  %2830 = vmatprep.mubr.msk.bf16.mxu1 %vm371_vm0, %v3366_v43 }
  0xc8   : > { %2831 = vmatmul.mubr.msk.bf16.vlgmr.msra.gmra.mrb[8].mxu1 %vm371_vm0, %v3376_v48 }
  0xc9   : > { %2866 = vmatprep.mubr.msk.f32.mxu1 %vm3150_vm2, %v3148_v0 }
 0x113   : > { %v2694_v60 = vpop.f32.mrb[0].mxu1 }
 0x114   : > { %v412_v61 = vpop.f32.mrb[1].mxu1 }
 0x115   : > { %v2695_v62 = vpop.f32.mrb[2].mxu1 }
 0x116   : > { %v415_v63 = vpop.f32.mrb[3].mxu1 }
 0x144   : > { %v2724_v4 = vpop.f32.mrb[0].mxu0 }
 0x145   : > { %v2875_v5 = vadd.f32 %v2724_v4, %v2694_v60  ;;  %v765_v6 = vpop.f32.mrb[1].mxu0 }
 0x146   : > { %v2876_v7 = vadd.f32 %v765_v6, %v412_v61  ;;  %v2725_v8 = vpop.f32.mrb[2].mxu0 }
 0x147   : > { %v2877_v9 = vadd.f32 %v2725_v8, %v2695_v62  ;;  %v768_v10 = vpop.f32.mrb[3].mxu0  ;;  %v792_v13 = vmul.f32 %v2875_v5, %v2519_v12 }
 0x148   : > { %v2878_v11 = vadd.f32 %v768_v10, %v415_v63  ;;  %v790_v15 = vmul.f32 %v2876_v7, %v2519_v12 }
 0x149   : > { %v793_v17 = vmul.f32 %v2877_v9, %v2519_v12  ;;  %v802_v23 = vadd.f32 %v2520_v14, %v792_v13 }
 0x14a   : > { %v791_v20 = vmul.f32 %v2878_v11, %v2519_v12  ;;  %v800_v27 = vadd.f32 %v2520_v14, %v790_v15 }
 0x14b   : > { %v803_v30 = vadd.f32 %v2520_v14, %v793_v17 }
 0x14c   : > { %v801_v33 = vadd.f32 %v2520_v14, %v791_v20  ;;  %v3046_v20 = vld [vmem:[%s3578_s4 + $0x8] sm:$0xff]  }
 0x157   : > { %v2760_v16 = vpop.f32.mrb[4].mxu1 }
 0x158   : > { %v1170_v18 = vmul.f32 %v2760_v16, %v2519_v12  ;;  %v1149_v19 = vpop.f32.mrb[5].mxu1 }
 0x159   : > { %v1168_v21 = vmul.f32 %v2519_v12, %v1149_v19  ;;  %v2761_v22 = vpop.f32.mrb[6].mxu1 }
 0x15a   : > { %v1174_v24 = vadd.f32 %v2520_v14, %v1170_v18  ;;  %v1171_v25 = vmul.f32 %v2761_v22, %v2519_v12  ;;  %v1152_v26 = vpop.f32.mrb[7].mxu1  ;;  %v3047_v22 = vld [vmem:[%s3578_s4 + $0x20] sm:$0xff]  }
 0x15b   : > { %v1172_v28 = vadd.f32 %v2520_v14, %v1168_v21  ;;  %v1169_v29 = vmul.f32 %v2519_v12, %v1152_v26 }
 0x15c   : > { %v1178_v31 = vmax.f32 %v802_v23, %v1174_v24  ;;  %v1175_v32 = vadd.f32 %v2520_v14, %v1171_v25 }
 0x15d   : > { %v1176_v34 = vmax.f32 %v800_v27, %v1172_v28  ;;  %v1173_v35 = vadd.f32 %v2520_v14, %v1169_v29  ;;  %v3048_v28 = vld [vmem:[%s3578_s4 + $0x28] sm:$0xff]  }
 0x15e   : > { %v1179_v36 = vmax.f32 %v803_v30, %v1175_v32  ;;  %v2334_v32 = vld [vmem:[%s3581_s7] sm:$0xff] }
 0x15f   : > { %v1177_v37 = vmax.f32 %v801_v33, %v1173_v35  ;;  %v2335_v33 = vld [vmem:[%s3581_s7 + $0x8] sm:$0xff]  ;;  %v3149_v35 = vmov 0.0|0.0  }
 0x160   : > { %2869 = vmatprep.subr.bf16.mxu1 %v3149_v35 }
 0x188   : > { %v2796_v38 = vpop.f32.mrb[4].mxu0 }
 0x189   : > { %v1546_v39 = vmul.f32 %v2796_v38, %v2519_v12  ;;  %v1525_v40 = vpop.f32.mrb[5].mxu0 }
 0x18a   : > { %v1544_v41 = vmul.f32 %v2519_v12, %v1525_v40  ;;  %v2797_v42 = vpop.f32.mrb[6].mxu0 }
 0x18b   : > { %v1550_v43 = vadd.f32 %v2520_v14, %v1546_v39  ;;  %v1547_v44 = vmul.f32 %v2797_v42, %v2519_v12  ;;  %v1528_v45 = vpop.f32.mrb[7].mxu0  ;;  %v2595_v39 = vld [vmem:[%s3579_s5] ss:$0 sm:$0xff] }
 0x18c   : > { %v1548_v46 = vadd.f32 %v2520_v14, %v1544_v41  ;;  %v1545_v47 = vmul.f32 %v2519_v12, %v1528_v45  ;;  %v2596_v41 = vld [vmem:[%s3580_s6] ss:$0 sm:$0xff] }
 0x18d   : > { %v1554_v48 = vmax.f32 %v1178_v31, %v1550_v43  ;;  %v1551_v49 = vadd.f32 %v2520_v14, %v1547_v44 }
 0x18e   : > { %v1552_v50 = vmax.f32 %v1176_v34, %v1548_v46  ;;  %v1549_v51 = vadd.f32 %v2520_v14, %v1545_v47  ;;  %v2336_v34 = vld [vmem:[%s3581_s7 + $0x10] sm:$0xff] }
 0x18f   : > { %v1555_v52 = vmax.f32 %v1179_v36, %v1551_v49  ;;  %v2870_v36 = vpack.c.bf16 %v2335_v33, %v2334_v32 }
 0x190   : > { %v1553_v53 = vmax.f32 %v1177_v37, %v1549_v51  ;;  %v2337_v37 = vld [vmem:[%s3581_s7 + $0x18] sm:$0xff] }
 0x191   : > { %2871 = vmatpush3.bf16.msra.mxu1 %v2870_v36  ;;  %v2873_v38 = vpack.c.bf16 %v2337_v37, %v2336_v34 }
 0x192   : > { %2872 = vmatprep.subr.bf16.mxu1 %v3149_v35 }
 0x195   : > { %2874 = vmatpush3.bf16.msra.mxu1 %v2873_v38 }
 0x19b   : > { %v2832_v54 = vpop.f32.mrb[8].mxu1 }
 0x19c   : > { %v1922_v55 = vmul.f32 %v2832_v54, %v2519_v12  ;;  %v1901_v56 = vpop.f32.mrb[9].mxu1 }
 0x19d   : > { %v1920_v57 = vmul.f32 %v2519_v12, %v1901_v56  ;;  %v2833_v58 = vpop.f32.mrb[10].mxu1 }
 0x19e   : > { %v1926_v59 = vadd.f32 %v2520_v14, %v1922_v55  ;;  %v1923_v60 = vmul.f32 %v2833_v58, %v2519_v12  ;;  %v1904_v61 = vpop.f32.mrb[11].mxu1 }
 0x19f   : > { %v1924_v62 = vadd.f32 %v2520_v14, %v1920_v57  ;;  %v1921_v63 = vmul.f32 %v2519_v12, %v1904_v61 }
 0x1a0   : > { %v1930_v1 = vmax.f32 %v1554_v48, %v1926_v59  ;;  %v1927_v2 = vadd.f32 %v2520_v14, %v1923_v60 }
 0x1a1   : > { %v1928_v4 = vmax.f32 %v1552_v50, %v1924_v62  ;;  %v1925_v5 = vadd.f32 %v2520_v14, %v1921_v63 }
 0x1a2   : > { %v1934_v6 = vmax.f32 %v1930_v1, 0.0  ;;  %v1931_v7 = vmax.f32 %v1555_v52, %v1927_v2  ;;  %v2243_v52 = vlaneseq }
 0x1a3   : > { %v1932_v8 = vmax.f32 %v1928_v4, 0.0  ;;  %v1929_v9 = vmax.f32 %v1553_v53, %v1925_v5 }
 0x1a4   : > { %1945 = vst.msk [vmem:[#allocation2 + $0x18] sm:$0xff] %vm1936_vm1, %v1934_v6  ;;  %v1935_v10 = vmax.f32 %v1931_v7, 0.0  ;;  %v2244_v57 = vshrl.u32 %v2243_v52, 7 }
 0x1a5   : > { %1943 = vst.msk [vmem:[#allocation2 + $0x8] sm:$0xff] %vm1936_vm1, %v1932_v8  ;;  %v1933_v11 = vmax.f32 %v1929_v9, 0.0 }
 0x1a6   : > { %1946 = vst.msk [vmem:[#allocation2 + $0x20] sm:$0xff] %vm1936_vm1, %v1935_v10  ;;  %v2245_v58 = vadd.s32 8, %v2244_v57  ;;  %v2246_v59 = vadd.s32 16, %v2244_v57  ;;  %v2247_v60 = vadd.s32 24, %v2244_v57  ;;  %v2252_v4 = vand.u32 3, %v2244_v57 }
 0x1a7   : > { %1944 = vst.msk [vmem:[#allocation2 + $0x10] sm:$0xff] %vm1936_vm1, %v1933_v11 }
 0x1a8   : > { %v2259_v5 = vand.u32 3, %v2245_v58  ;;  %v2266_v6 = vand.u32 3, %v2246_v59  ;;  %vm2296_vm3 = vcmp.eq.s32.totalorder %v2252_v4, 0 }
 0x1aa   : > { %vm2297_vm4 = vcmp.eq.s32.totalorder %v2259_v5, 0  ;;  %vm2298_vm5 = vcmp.eq.s32.totalorder %v2266_v6, 0 }
 0x1ab   : > { %v1959_v14 = vld [vmem:[#allocation2 + $0x18] sm:$0xff] }
 0x1ac   : > { %v1957_v12 = vld [vmem:[#allocation2 + $0x8] sm:$0xff] }
 0x1ad   : > { %v1960_v13 = vld [vmem:[#allocation2 + $0x20] sm:$0xff] }
 0x1ae   : > { %v1958_v15 = vld [vmem:[#allocation2 + $0x10] sm:$0xff]  ;;  %v1962_v18 = vpack.c.bf16 %v1960_v13, %v1959_v14  ;;  %v1947_v19 = vld [vmem:[#allocation2 + $0x7] sm:$0xff]  ;;  %v1950_v24 = vld [vmem:[#allocation2 + $0x1f] sm:$0xff]  ;;  %v2273_v13 = vand.u32 3, %v2247_v60 }
 0x1af   : > { %v1948_v16 = vld [vmem:[#allocation2 + $0xf] sm:$0xff]  ;;  %v1961_v17 = vpack.c.bf16 %v1958_v15, %v1957_v12  ;;  %v1949_v23 = vld [vmem:[#allocation2 + $0x17] sm:$0xff]  ;;  %v2105_v30 = vld [vmem:[#allocation2 + $0x21] sm:$0xff] }
 0x1b0   : > { %v1951_v21 = vpack.c.bf16 %v1948_v16, %v1947_v19  ;;  %v2102_v25 = vld [vmem:[#allocation2 + $0x9] sm:$0xff]  ;;  %v2103_v26 = vld [vmem:[#allocation2 + $0x11] sm:$0xff]  ;;  %v1952_v27 = vpack.c.bf16 %v1950_v24, %v1949_v23  ;;  %vm2299_vm6 = vcmp.eq.s32.totalorder %v2273_v13, 0 }
 0x1b1   : > { %2838 = vmatprep.mubr.msk.bf16.mxu0 %vm1936_vm1, %v1961_v17  ;;  %v2106_v29 = vpack.c.bf16 %v2103_v26, %v2102_v25 }
 0x1b2   : > { %2839 = vmatmul.mubr.msk.bf16.vlgmr.msra.gmra.mrb[8].mxu0 %vm1936_vm1, %v1962_v18 }
 0x1b3   : > { %2843 = vmatpush3.bf16.msra.mxu0 %v3467_v3  ;;  %2846 = vmatprep.mubr.msk.bf16.mxu0 %vm1936_vm1, %v1951_v21  ;;  %v2104_v3 = vld [vmem:[#allocation2 + $0x19] sm:$0xff] }
 0x1b4   : > { %2844 = vmatprep.subr.bf16.mxu0 %v3046_v20  ;;  %v2107_v31 = vpack.c.bf16 %v2105_v30, %v2104_v3 }
 0x1b7   : > { %2845 = vmatpush3.bf16.msra.mxu0 %v3046_v20 }
 0x1b8   : > { %2850 = vmatprep.subr.bf16.mxu0 %v3047_v22 }
 0x1be   : > { %2847 = vmatmul.mubr.msk.bf16.vlgmr.msra.gmra.mrb[8].mxu0 %vm1936_vm1, %v1952_v27 }
 0x1bf   : > { %2851 = vmatpush3.bf16.msra.mxu0 %v3047_v22  ;;  %2854 = vmatprep.mubr.msk.bf16.mxu0 %vm1936_vm1, %v2106_v29 }
 0x1c0   : > { %2852 = vmatprep.subr.bf16.mxu0 %v3048_v28 }
 0x1c3   : > { %2853 = vmatpush3.bf16.msra.mxu0 %v3048_v28 }
 0x1ca   : > { %2855 = vmatmul.mubr.msk.bf16.vlgmr.msra.gmra.mrb[8].mxu0 %vm1936_vm1, %v2107_v31 }
 0x29d   : > { %v2856_v40 = vpop.f32.mrb[8].mxu0 }
 0x29e   : > { %v2193_v42 = vmul.f32 %v2856_v40, %v2595_v39  ;;  %v2165_v43 = vpop.f32.mrb[9].mxu0 }
 0x29f   : > { %v2191_v44 = vmul.f32 %v2595_v39, %v2165_v43  ;;  %v2857_v45 = vpop.f32.mrb[10].mxu0 }
 0x2a0   : > { %v2204_v46 = vadd.f32 %v2596_v41, %v2193_v42  ;;  %v2194_v47 = vmul.f32 %v2857_v45, %v2595_v39  ;;  %v2168_v0 = vpop.f32.mrb[11].mxu0 }
 0x2a1   : > { %v2202_v48 = vadd.f32 %v2596_v41, %v2191_v44  ;;  %v2192_v49 = vmul.f32 %v2595_v39, %v2168_v0  ;;  %v2338_v44 = vld [vmem:[%s3582_s8] sm:$0x1] }
 0x2a2   : > { %v2208_v50 = vmax.f32 %v2204_v46, 0.0  ;;  %v2205_v51 = vadd.f32 %v2596_v41, %v2194_v47 }
 0x2a3   : > { %v2206_v53 = vmax.f32 %v2202_v48, 0.0  ;;  %v2203_v54 = vadd.f32 %v2596_v41, %v2192_v49 }
 0x2a4   : > { %2217 = vst.msk [vmem:[#allocation3 + $0x10] sm:$0xff] %vm1936_vm1, %v2208_v50  ;;  %v2209_v55 = vmax.f32 %v2205_v51, 0.0 }
 0x2a5   : > { %2215 = vst.msk [vmem:[#allocation3] sm:$0xff] %vm1936_vm1, %v2206_v53  ;;  %v2207_v56 = vmax.f32 %v2203_v54, 0.0 }
 0x2a6   : > { %2218 = vst.msk [vmem:[#allocation3 + $0x18] sm:$0xff] %vm1936_vm1, %v2209_v55 }
 0x2a7   : > { %2216 = vst.msk [vmem:[#allocation3 + $0x8] sm:$0xff] %vm1936_vm1, %v2207_v56 }
 0x2ad   : > { %v2222_v61 = vld [vmem:[#allocation3 + $0x19] sm:$0xff]  ;;  %v2221_v2 = vld [vmem:[#allocation3 + $0x11] sm:$0xff] }
 0x2ae   : > { %v2226_v62 = vmax.f32 %v2209_v55, %v2222_v61  ;;  %v2219_v63 = vld [vmem:[#allocation3 + $0x1] sm:$0xff]  ;;  %v2220_v1 = vld [vmem:[#allocation3 + $0x9] sm:$0xff]  ;;  %v2225_v10 = vmax.f32 %v2208_v50, %v2221_v2  ;;  %v2229_v16 = vld [vmem:[#allocation3 + $0x12] sm:$0xff] }
 0x2af   : > { %v2230_v7 = vld [vmem:[#allocation3 + $0x1a] sm:$0xff]  ;;  %v2223_v8 = vmax.f32 %v2206_v53, %v2219_v63  ;;  %v2224_v9 = vmax.f32 %v2207_v56, %v2220_v1  ;;  %v2227_v12 = vld [vmem:[#allocation3 + $0x2] sm:$0xff]  ;;  %v2228_v15 = vld [vmem:[#allocation3 + $0xa] sm:$0xff] }
 0x2b0   : > { %v2234_v11 = vmax.f32 %v2226_v62, %v2230_v7  ;;  %v2238_v17 = vld [vmem:[#allocation3 + $0x1b] sm:$0xff]  ;;  %v2233_v19 = vmax.f32 %v2225_v10, %v2229_v16  ;;  %v2235_v20 = vld [vmem:[#allocation3 + $0x3] sm:$0xff]  ;;  %v2236_v21 = vld [vmem:[#allocation3 + $0xb] sm:$0xff] }
 0x2b1   : > { %v2231_v14 = vmax.f32 %v2223_v8, %v2227_v12  ;;  %v2232_v18 = vmax.f32 %v2224_v9, %v2228_v15  ;;  %v2237_v22 = vld [vmem:[#allocation3 + $0x13] sm:$0xff] }
 0x2b2   : > { %v2242_v23 = vmax.f32 %v2234_v11, %v2238_v17  ;;  %v2241_v26 = vmax.f32 %v2233_v19, %v2237_v22 }
 0x2b3   : > { %v2239_v24 = vmax.f32 %v2231_v14, %v2235_v20  ;;  %v2240_v25 = vmax.f32 %v2232_v18, %v2236_v21 }
 0x2b4   : > { %v2318_v29 = vsel %vm2298_vm5, %v2241_v26, 0.0  ;;  %v2319_v31 = vsel %vm2299_vm6, %v2242_v23, 0.0 }
 0x2b5   : > { %v2316_v27 = vsel %vm2296_vm3, %v2239_v24, 0.0  ;;  %v2317_v28 = vsel %vm2297_vm4, %v2240_v25, 0.0  ;;  %v2323_v33 = vsel %vm1936_vm1, %v2318_v29, 0.0  ;;  %v2325_v35 = vsel %vm1936_vm1, %v2319_v31, 0.0 }
 0x2b6   : > { %v2320_v3 = vsel %vm1936_vm1, %v2316_v27, 0.0  ;;  %v2321_v30 = vsel %vm1936_vm1, %v2317_v28, 0.0 }
 0x2b7   : > { %v2322_v32 = vadd.f32 %v2321_v30, %v2320_v3 }
 0x2b9   : > { %v2324_v34 = vadd.f32 %v2323_v33, %v2322_v32 }
 0x2bb   : > { %v2326_v36 = vadd.f32 %v2325_v35, %v2324_v34 }
 0x2bd   : > { %v2327_v37 = vrot.slane %v2326_v36, 4 }
 0x2bf   : > { %v2328_v38 = vadd.f32 %v2327_v37, %v2326_v36 }
 0x2c1   : > { %v2329_v39 = vrot.slane %v2328_v38, 2 }
 0x2c3   : > { %v2330_v40 = vadd.f32 %v2329_v39, %v2328_v38 }
 0x2c5   : > { %v2331_v41 = vrot.slane %v2330_v40, 1 }
 0x2c7   : > { %v2332_v42 = vadd.f32 %v2331_v41, %v2330_v40 }
 0x2c9   : > { %v2333_v43 = vmul.f32 0.125, %v2332_v42 }
 0x2cb   : > { %2867 = vmatmul.mubr.msk.f32.vlgmr.msra.gmra.mrb[12].mxu1 %vm1936_vm1, %v2333_v43 }
 0x39e   : > { %v2408_v45 = vpop.f32.mrb[12].mxu1 }
 0x39f   : > { %v2409_v46 = vadd.f32 %v2408_v45, %v2338_v44  ;;  %v2868_v47 = vpop.f32.mrb[13].mxu1 }
 0x3a1   : > { %2413 = vst.msk [vmem:[%s339_s29] sm:$0x1] %vm2412_vm7, %v2409_v46 }
 0x3a2   : > { %3090 = shalt.err (!%p3087_p7)
}
 0x3a3   : > { %s3091_s25 = scalar_lea.hbm %s3532_s21, 16  ;;  %s3095_s29 = scalar_lea.hbm %s3583_s9, 32 }
 0x3a4   : > { %p3092_p8 = scmp.ne.s32.totalorder %s3532_s21, %s3091_s25  ;;  %p3096_p1 = scmp.lt.u32.totalorder %s3532_s21, %s3583_s9 }
 0x3a5   : > { %p3097_p0 = scmp.lt.u32.totalorder %s3095_s29, %s3091_s25  ;;  %p3099_p6 = scmp.lt.u32.totalorder %s3091_s25, %s3532_s21 }
 0x3a6   : > { %p3093_p11 = pnand %p3092_p8, %p3594_p9 }
 0x3a7   : > { %p3098_p5 = por %p3097_p0, %p3096_p1 }
 0x3a8   : > { %p3094_p13 = pneg %p3093_p11 }
 0x3a9   : > { %p3100_p10 = por %p3099_p6, %p3098_p5 }
 0x3ab   : > { %p3101_p12 = pnand %p3100_p10, %p3094_p13 }
 0x3ad   : > { %3104 = shalt.err (!%p3101_p12)
}
 0x3ae   : > { %2968 = dma.vmem_to_hbm [thread:$0]  (%p3594_p9), %s3534_s14, 16, %s3532_s21, %s2415_s23  }
 0x3af PF: > { %p2980_p2 = scmp.ge.s32.totalorder %s3143_s12, 2  ;;  %s2439_s17 = sand.u32 1, %s3131_s30  }
 0x3b0   : > { %p3595_p3 = scmp.ne.s32.totalorder %s3588_s20, 0  ;;  %s2440_s13 = scalar_lea.sflag [#allocation6], %s2439_s17 }
 0x3b2   : > { %p2975_p4 = pnand %p2980_p2, %p3595_p3 }
 0x3b4   : > { %3126 = dma.done.wait (!%p2975_p4), %s2440_s13, 16  }
 0x3b5   : > { %3128 = vsyncadd (!%p2975_p4), %s2440_s13, 4294967280  ;;  %p20_p7 = scmp.ge.s32.totalorder %s3227_s15, 4   ;;  %s3596_s30 = smov %s3135_s10 }
 0x3b6   : > { %s3597_s10 = smov %s3139_s11  ;;  %s3598_s11 = smov %s3238_s18 }
 0x3b7   : > { %s3599_s12 = smov %s3227_s15  ;;  %22 = sbr.rel (!%p20_p7) target bundleno = 4 (0x4), region = 121 }
 0x3be   :  { %2444 = vsyncpa [#allocation5], 1 }
 0x3bf   :  { %2446 = vsyncpa [#allocation5 + $0x1], 1 }
 0x3c0   :  { %2447 = vsyncpa [#allocation6], 1 }
 0x3c1   :  { %2449 = vsyncpa [#allocation6 + $0x1], 1 }

</bundles_post_ra>
